<compile_context>
chip_gen: v7x
topology: tpu7x:2x2x1
jax: 0.10.0
libtpu: 0.0.40
codegen_flags: <defaults>
</compile_context>

<pallas_src>
import functools

import jax
import jax.numpy as jnp
from jax import lax
from jax.experimental import pallas as pl
from jax.experimental.pallas import tpu as pltpu

KSIZE = 7
PAD = (KSIZE - 1) // 2  # 3
NTAPS = 2 * KSIZE * KSIZE  # 98


def attention_gate_kernel(w_ref, bn_ref, x_ref, o_ref, pad_ref, *, height, width):
    # x_ref block: (nb, C, H, W)
    # w_ref: SMEM (98,) f32 ; bn_ref: SMEM (2,) f32 (scale, shift)
    # pad_ref: VMEM (2, H+6, W+6) f32 padded conv scratch
    H, W = height, width
    nb = x_ref.shape[0]

    # Zero only the 3-wide border of the padded scratch, once per grid step.
    # The interior is fully overwritten for every image; the border never
    # becomes dirty.  Not guarded on program_id==0 (see header: megacore-safe).
    pad_ref[:, :PAD, :] = jnp.zeros((2, PAD, W + 2 * PAD), jnp.float32)
    pad_ref[:, PAD + H:, :] = jnp.zeros((2, PAD, W + 2 * PAD), jnp.float32)
    pad_ref[:, :, :PAD] = jnp.zeros((2, H + 2 * PAD, PAD), jnp.float32)
    pad_ref[:, :, PAD + W:] = jnp.zeros((2, H + 2 * PAD, PAD), jnp.float32)

    # Hoist all SMEM scalar reads out of the per-image loop.
    bn_scale = bn_ref[0]
    bn_shift = bn_ref[1]
    wv = [w_ref[i] for i in range(NTAPS)]

    def body(b, carry):
        # --- ZPool over channels: max in native dtype (exact), mean in f32.
        # The loaded value is consumed immediately by the reductions; nothing
        # image-sized stays live across the conv section below.
        xb = x_ref[b]                                           # (C, H, W)
        zmax = jnp.max(xb, axis=0).astype(jnp.float32)          # (H, W) f32
        zmean = jnp.mean(xb.astype(jnp.float32), axis=0)        # (H, W) f32

        # --- bulk store of the 2-channel compressed map into the padded scratch
        pad_ref[0, PAD:PAD + H, PAD:PAD + W] = zmax
        pad_ref[1, PAD:PAD + H, PAD:PAD + W] = zmean

        # --- 7x7 conv (2 -> 1): hoist each (c, kh) row slab once, slide kw ---
        acc = jnp.zeros((H, W), jnp.float32)
        for c in range(2):
            for kh in range(KSIZE):
                slab = pad_ref[c, kh:kh + H, :]                 # (H, W + 6) f32
                for kw in range(KSIZE):
                    w = wv[c * KSIZE * KSIZE + kh * KSIZE + kw]
                    acc = acc + w * slab[:, kw:kw + W]

        # --- folded (eval-mode) BatchNorm + sigmoid (reciprocal on the EUP) ---
        y = acc * bn_scale + bn_shift
        gate = pl.reciprocal(1.0 + jnp.exp(-y), approx=True)    # (H, W) f32

        # --- gating multiply + store in the I/O dtype; fresh re-read of x ---
        gate_c = gate.astype(o_ref.dtype)
        o_ref[b] = (x_ref[b] * gate_c).astype(o_ref.dtype)
        return carry

    lax.fori_loop(0, nb, body, 0)


def _vmem_capacity_bytes():
    """Physical VMEM per TensorCore; conservative 128 MiB fallback on failure."""
    try:
        info = pltpu.get_tpu_info()
        cap = int(getattr(info, "vmem_capacity_bytes", 0))
        if cap > 0:
            return cap
    except Exception:
        pass
    return 128 << 20


def _pick_images_per_block(n, per_image_bytes, block_budget, min_grid_steps):
    # in + out blocks, each double-buffered => ~4 * nb * per_image_bytes resident.
    max_nb = max(1, int(block_budget // (4 * per_image_bytes)))
    nb = max(1, min(n, max_nb))
    if min_grid_steps > 1:
        # Keep >= min_grid_steps grid steps so the "parallel" batch axis can be
        # sharded across both TensorCores (v7x-class chips).
        nb = min(nb, max(1, n // min_grid_steps))
    while n % nb:
        nb -= 1
    return nb


def attention_gate(x, conv_w, bn_gamma, bn_beta, bn_mean, bn_var, eps=1e-5):
    """x: (N, C, H, W); conv_w: (1, 2, 7, 7); bn_*: (1,). Returns (N, C, H, W)."""
    N, C, H, W = x.shape
    dtype = x.dtype

    w_flat = conv_w.reshape(-1).astype(jnp.float32)                     # (98,)
    s = bn_gamma.astype(jnp.float32) / jnp.sqrt(bn_var.astype(jnp.float32) + eps)
    bn_params = jnp.stack(
        [s[0], bn_beta.astype(jnp.float32)[0] - bn_mean.astype(jnp.float32)[0] * s[0]]
    ).astype(jnp.float32)                                               # (scale, shift)

    # Generation-aware block / VMEM-limit sizing.
    vmem_cap = _vmem_capacity_bytes()
    if vmem_cap <= (64 << 20):      # v7x-class: 64 MiB physical, 2 TensorCores
        block_budget, limit_cap, min_grid_steps = (20 << 20), (56 << 20), 2
    else:                           # v5e / v6e: 128 MiB physical, 1 TensorCore
        block_budget, limit_cap, min_grid_steps = (40 << 20), (100 << 20), 1

    per_image_bytes = C * H * W * x.dtype.itemsize
    nb = _pick_images_per_block(N, per_image_bytes, block_budget, min_grid_steps)

    scratch_bytes = 2 * (H + 2 * PAD) * (W + 2 * PAD) * 4
    margin = max(2 << 20, 8 * (H + 2 * PAD) * (W + 2 * PAD) * 4)
    vmem_limit = int(min(limit_cap,
                         max(8 << 20,
                             4 * nb * per_image_bytes + scratch_bytes + margin)))

    out = pl.pallas_call(
        functools.partial(attention_gate_kernel, height=H, width=W),
        out_shape=jax.ShapeDtypeStruct((N, C, H, W), dtype),
        grid=(N // nb,),
        in_specs=[
            pl.BlockSpec(memory_space=pltpu.MemorySpace.SMEM),          # conv weights
            pl.BlockSpec(memory_space=pltpu.MemorySpace.SMEM),          # bn scale/shift
            pl.BlockSpec((nb, C, H, W), lambda n: (n, 0, 0, 0)),        # x
        ],
        out_specs=pl.BlockSpec((nb, C, H, W), lambda n: (n, 0, 0, 0)),
        scratch_shapes=[
            pltpu.VMEM((2, H + 2 * PAD, W + 2 * PAD), jnp.float32),     # padded conv map
        ],
        compiler_params=pltpu.CompilerParams(
            dimension_semantics=("parallel",),
            vmem_limit_bytes=vmem_limit),
    )(w_flat, bn_params, x)

    return out


def attention_gate_ref(x, conv_w, bn_gamma, bn_beta, bn_mean, bn_var, eps=1e-5):
    """Pure-JAX reference (eval-mode BN)."""
    zmax = jnp.max(x, axis=1, keepdims=True)
    zmean = jnp.mean(x, axis=1, keepdims=True)
    cm = jnp.concatenate([zmax, zmean], axis=1)
    y = jax.lax.conv_general_dilated(
        cm, conv_w, window_strides=(1, 1), padding=[(PAD, PAD), (PAD, PAD)],
        dimension_numbers=("NCHW", "OIHW", "NCHW"))
    s = bn_gamma / jnp.sqrt(bn_var + eps)
    y = y * s.reshape(1, -1, 1, 1) + (bn_beta - bn_mean * s).reshape(1, -1, 1, 1)
    return x * jax.nn.sigmoid(y)


if __name__ == "__main__":
    key = jax.random.PRNGKey(0)
    k_x, k_w = jax.random.split(key)

    N, C, H, W = 2, 4, 16, 16
    x = jax.random.normal(k_x, (N, C, H, W), dtype=jnp.float32)

    # Deterministic params: Conv2d(2,1,7,7,bias=False) + BatchNorm2d(1) init stats.
    conv_w = 0.1 * jax.random.normal(k_w, (1, 2, KSIZE, KSIZE), dtype=jnp.float32)
    bn_gamma = jnp.ones((1,), jnp.float32)
    bn_beta = jnp.zeros((1,), jnp.float32)
    bn_mean = jnp.zeros((1,), jnp.float32)
    bn_var = jnp.ones((1,), jnp.float32)

    out = attention_gate(x, conv_w, bn_gamma, bn_beta, bn_mean, bn_var)
    out = jax.block_until_ready(out)

    ref = attention_gate_ref(x, conv_w, bn_gamma, bn_beta, bn_mean, bn_var)
    ref = jax.block_until_ready(ref)

    assert out.shape == (N, C, H, W)
    assert bool(jnp.all(jnp.isfinite(out)))
    max_err = float(jnp.max(jnp.abs(out - ref)))
    assert max_err < 5e-2, f"max abs error {max_err}"
    print("KERNEL_OK")
</pallas_src>

<mosaic_0001>
module attributes {stable_mosaic.version = 11 : i64} {
  func.func @attention_gate_kernel(%arg0: i32, %arg1: memref<98xf32, #tpu.memory_space<smem>>, %arg2: memref<2xf32, #tpu.memory_space<smem>>, %arg3: memref<2x4x16x16xf32, #tpu.memory_space<vmem>>, %arg4: memref<2x4x16x16xf32, #tpu.memory_space<vmem>>, %arg5: memref<2x22x22xf32, #tpu.memory_space<vmem>>) attributes {dimension_semantics = [#tpu.dimension_semantics<parallel>], iteration_bounds = array<i64: 1>, scalar_prefetch = 0 : i64, scratch_operands = 1 : i64, tpu.core_type = #tpu.core_type<tc>, window_params = [{transform_indices = @transform_0, window_bounds = array<i64: 98>}, {transform_indices = @transform_1, window_bounds = array<i64: 2>}, {transform_indices = @transform_2, window_bounds = array<i64: 2, 4, 16, 16>}, {transform_indices = @transform_3, window_bounds = array<i64: 2, 4, 16, 16>}]} {
    %cst = arith.constant 0.000000e+00 : f32
    %0 = vector.broadcast %cst : f32 to vector<2x3x22xf32>
    %c0 = arith.constant 0 : index
    %c0_0 = arith.constant 0 : index
    %c0_1 = arith.constant 0 : index
    %1 = vector.load %arg5[%c0, %c0_0, %c0_1] : memref<2x22x22xf32, #tpu.memory_space<vmem>>, vector<2x3x22xf32>
    tpu.vector_store %arg5[%c0, %c0_0, %c0_1], %0 {strides = array<i32>} : memref<2x22x22xf32, #tpu.memory_space<vmem>>, vector<2x3x22xf32>,
    %cst_2 = arith.constant 0.000000e+00 : f32
    %2 = vector.broadcast %cst_2 : f32 to vector<2x3x22xf32>
    %c0_3 = arith.constant 0 : index
    %c19 = arith.constant 19 : index
    %c0_4 = arith.constant 0 : index
    %3 = vector.load %arg5[%c0_3, %c19, %c0_4] : memref<2x22x22xf32, #tpu.memory_space<vmem>>, vector<2x3x22xf32>
    tpu.vector_store %arg5[%c0_3, %c19, %c0_4], %2 {strides = array<i32>} : memref<2x22x22xf32, #tpu.memory_space<vmem>>, vector<2x3x22xf32>,
    %cst_5 = arith.constant 0.000000e+00 : f32
    %4 = vector.broadcast %cst_5 : f32 to vector<2x22x3xf32>
    %c0_6 = arith.constant 0 : index
    %c0_7 = arith.constant 0 : index
    %c0_8 = arith.constant 0 : index
    %5 = vector.load %arg5[%c0_6, %c0_7, %c0_8] : memref<2x22x22xf32, #tpu.memory_space<vmem>>, vector<2x22x3xf32>
    tpu.vector_store %arg5[%c0_6, %c0_7, %c0_8], %4 {strides = array<i32>} : memref<2x22x22xf32, #tpu.memory_space<vmem>>, vector<2x22x3xf32>,
    %cst_9 = arith.constant 0.000000e+00 : f32
    %6 = vector.broadcast %cst_9 : f32 to vector<2x22x3xf32>
    %c0_10 = arith.constant 0 : index
    %c0_11 = arith.constant 0 : index
    %c19_12 = arith.constant 19 : index
    %7 = vector.load %arg5[%c0_10, %c0_11, %c19_12] : memref<2x22x22xf32, #tpu.memory_space<vmem>>, vector<2x22x3xf32>
    tpu.vector_store %arg5[%c0_10, %c0_11, %c19_12], %6 {strides = array<i32>} : memref<2x22x22xf32, #tpu.memory_space<vmem>>, vector<2x22x3xf32>,
    %c0_13 = arith.constant 0 : index
    %8 = memref.load %arg2[%c0_13] : memref<2xf32, #tpu.memory_space<smem>>
    %c1 = arith.constant 1 : index
    %9 = memref.load %arg2[%c1] : memref<2xf32, #tpu.memory_space<smem>>
    %c0_14 = arith.constant 0 : index
    %10 = memref.load %arg1[%c0_14] : memref<98xf32, #tpu.memory_space<smem>>
    %c1_15 = arith.constant 1 : index
    %11 = memref.load %arg1[%c1_15] : memref<98xf32, #tpu.memory_space<smem>>
    %c2 = arith.constant 2 : index
    %12 = memref.load %arg1[%c2] : memref<98xf32, #tpu.memory_space<smem>>
    %c3 = arith.constant 3 : index
    %13 = memref.load %arg1[%c3] : memref<98xf32, #tpu.memory_space<smem>>
    %c4 = arith.constant 4 : index
    %14 = memref.load %arg1[%c4] : memref<98xf32, #tpu.memory_space<smem>>
    %c5 = arith.constant 5 : index
    %15 = memref.load %arg1[%c5] : memref<98xf32, #tpu.memory_space<smem>>
    %c6 = arith.constant 6 : index
    %16 = memref.load %arg1[%c6] : memref<98xf32, #tpu.memory_space<smem>>
    %c7 = arith.constant 7 : index
    %17 = memref.load %arg1[%c7] : memref<98xf32, #tpu.memory_space<smem>>
    %c8 = arith.constant 8 : index
    %18 = memref.load %arg1[%c8] : memref<98xf32, #tpu.memory_space<smem>>
    %c9 = arith.constant 9 : index
    %19 = memref.load %arg1[%c9] : memref<98xf32, #tpu.memory_space<smem>>
    %c10 = arith.constant 10 : index
    %20 = memref.load %arg1[%c10] : memref<98xf32, #tpu.memory_space<smem>>
    %c11 = arith.constant 11 : index
    %21 = memref.load %arg1[%c11] : memref<98xf32, #tpu.memory_space<smem>>
    %c12 = arith.constant 12 : index
    %22 = memref.load %arg1[%c12] : memref<98xf32, #tpu.memory_space<smem>>
    %c13 = arith.constant 13 : index
    %23 = memref.load %arg1[%c13] : memref<98xf32, #tpu.memory_space<smem>>
    %c14 = arith.constant 14 : index
    %24 = memref.load %arg1[%c14] : memref<98xf32, #tpu.memory_space<smem>>
    %c15 = arith.constant 15 : index
    %25 = memref.load %arg1[%c15] : memref<98xf32, #tpu.memory_space<smem>>
    %c16 = arith.constant 16 : index
    %26 = memref.load %arg1[%c16] : memref<98xf32, #tpu.memory_space<smem>>
    %c17 = arith.constant 17 : index
    %27 = memref.load %arg1[%c17] : memref<98xf32, #tpu.memory_space<smem>>
    %c18 = arith.constant 18 : index
    %28 = memref.load %arg1[%c18] : memref<98xf32, #tpu.memory_space<smem>>
    %c19_16 = arith.constant 19 : index
    %29 = memref.load %arg1[%c19_16] : memref<98xf32, #tpu.memory_space<smem>>
    %c20 = arith.constant 20 : index
    %30 = memref.load %arg1[%c20] : memref<98xf32, #tpu.memory_space<smem>>
    %c21 = arith.constant 21 : index
    %31 = memref.load %arg1[%c21] : memref<98xf32, #tpu.memory_space<smem>>
    %c22 = arith.constant 22 : index
    %32 = memref.load %arg1[%c22] : memref<98xf32, #tpu.memory_space<smem>>
    %c23 = arith.constant 23 : index
    %33 = memref.load %arg1[%c23] : memref<98xf32, #tpu.memory_space<smem>>
    %c24 = arith.constant 24 : index
    %34 = memref.load %arg1[%c24] : memref<98xf32, #tpu.memory_space<smem>>
    %c25 = arith.constant 25 : index
    %35 = memref.load %arg1[%c25] : memref<98xf32, #tpu.memory_space<smem>>
    %c26 = arith.constant 26 : index
    %36 = memref.load %arg1[%c26] : memref<98xf32, #tpu.memory_space<smem>>
    %c27 = arith.constant 27 : index
    %37 = memref.load %arg1[%c27] : memref<98xf32, #tpu.memory_space<smem>>
    %c28 = arith.constant 28 : index
    %38 = memref.load %arg1[%c28] : memref<98xf32, #tpu.memory_space<smem>>
    %c29 = arith.constant 29 : index
    %39 = memref.load %arg1[%c29] : memref<98xf32, #tpu.memory_space<smem>>
    %c30 = arith.constant 30 : index
    %40 = memref.load %arg1[%c30] : memref<98xf32, #tpu.memory_space<smem>>
    %c31 = arith.constant 31 : index
    %41 = memref.load %arg1[%c31] : memref<98xf32, #tpu.memory_space<smem>>
    %c32 = arith.constant 32 : index
    %42 = memref.load %arg1[%c32] : memref<98xf32, #tpu.memory_space<smem>>
    %c33 = arith.constant 33 : index
    %43 = memref.load %arg1[%c33] : memref<98xf32, #tpu.memory_space<smem>>
    %c34 = arith.constant 34 : index
    %44 = memref.load %arg1[%c34] : memref<98xf32, #tpu.memory_space<smem>>
    %c35 = arith.constant 35 : index
    %45 = memref.load %arg1[%c35] : memref<98xf32, #tpu.memory_space<smem>>
    %c36 = arith.constant 36 : index
    %46 = memref.load %arg1[%c36] : memref<98xf32, #tpu.memory_space<smem>>
    %c37 = arith.constant 37 : index
    %47 = memref.load %arg1[%c37] : memref<98xf32, #tpu.memory_space<smem>>
    %c38 = arith.constant 38 : index
    %48 = memref.load %arg1[%c38] : memref<98xf32, #tpu.memory_space<smem>>
    %c39 = arith.constant 39 : index
    %49 = memref.load %arg1[%c39] : memref<98xf32, #tpu.memory_space<smem>>
    %c40 = arith.constant 40 : index
    %50 = memref.load %arg1[%c40] : memref<98xf32, #tpu.memory_space<smem>>
    %c41 = arith.constant 41 : index
    %51 = memref.load %arg1[%c41] : memref<98xf32, #tpu.memory_space<smem>>
    %c42 = arith.constant 42 : index
    %52 = memref.load %arg1[%c42] : memref<98xf32, #tpu.memory_space<smem>>
    %c43 = arith.constant 43 : index
    %53 = memref.load %arg1[%c43] : memref<98xf32, #tpu.memory_space<smem>>
    %c44 = arith.constant 44 : index
    %54 = memref.load %arg1[%c44] : memref<98xf32, #tpu.memory_space<smem>>
    %c45 = arith.constant 45 : index
    %55 = memref.load %arg1[%c45] : memref<98xf32, #tpu.memory_space<smem>>
    %c46 = arith.constant 46 : index
    %56 = memref.load %arg1[%c46] : memref<98xf32, #tpu.memory_space<smem>>
    %c47 = arith.constant 47 : index
    %57 = memref.load %arg1[%c47] : memref<98xf32, #tpu.memory_space<smem>>
    %c48 = arith.constant 48 : index
    %58 = memref.load %arg1[%c48] : memref<98xf32, #tpu.memory_space<smem>>
    %c49 = arith.constant 49 : index
    %59 = memref.load %arg1[%c49] : memref<98xf32, #tpu.memory_space<smem>>
    %c50 = arith.constant 50 : index
    %60 = memref.load %arg1[%c50] : memref<98xf32, #tpu.memory_space<smem>>
    %c51 = arith.constant 51 : index
    %61 = memref.load %arg1[%c51] : memref<98xf32, #tpu.memory_space<smem>>
    %c52 = arith.constant 52 : index
    %62 = memref.load %arg1[%c52] : memref<98xf32, #tpu.memory_space<smem>>
    %c53 = arith.constant 53 : index
    %63 = memref.load %arg1[%c53] : memref<98xf32, #tpu.memory_space<smem>>
    %c54 = arith.constant 54 : index
    %64 = memref.load %arg1[%c54] : memref<98xf32, #tpu.memory_space<smem>>
    %c55 = arith.constant 55 : index
    %65 = memref.load %arg1[%c55] : memref<98xf32, #tpu.memory_space<smem>>
    %c56 = arith.constant 56 : index
    %66 = memref.load %arg1[%c56] : memref<98xf32, #tpu.memory_space<smem>>
    %c57 = arith.constant 57 : index
    %67 = memref.load %arg1[%c57] : memref<98xf32, #tpu.memory_space<smem>>
    %c58 = arith.constant 58 : index
    %68 = memref.load %arg1[%c58] : memref<98xf32, #tpu.memory_space<smem>>
    %c59 = arith.constant 59 : index
    %69 = memref.load %arg1[%c59] : memref<98xf32, #tpu.memory_space<smem>>
    %c60 = arith.constant 60 : index
    %70 = memref.load %arg1[%c60] : memref<98xf32, #tpu.memory_space<smem>>
    %c61 = arith.constant 61 : index
    %71 = memref.load %arg1[%c61] : memref<98xf32, #tpu.memory_space<smem>>
    %c62 = arith.constant 62 : index
    %72 = memref.load %arg1[%c62] : memref<98xf32, #tpu.memory_space<smem>>
    %c63 = arith.constant 63 : index
    %73 = memref.load %arg1[%c63] : memref<98xf32, #tpu.memory_space<smem>>
    %c64 = arith.constant 64 : index
    %74 = memref.load %arg1[%c64] : memref<98xf32, #tpu.memory_space<smem>>
    %c65 = arith.constant 65 : index
    %75 = memref.load %arg1[%c65] : memref<98xf32, #tpu.memory_space<smem>>
    %c66 = arith.constant 66 : index
    %76 = memref.load %arg1[%c66] : memref<98xf32, #tpu.memory_space<smem>>
    %c67 = arith.constant 67 : index
    %77 = memref.load %arg1[%c67] : memref<98xf32, #tpu.memory_space<smem>>
    %c68 = arith.constant 68 : index
    %78 = memref.load %arg1[%c68] : memref<98xf32, #tpu.memory_space<smem>>
    %c69 = arith.constant 69 : index
    %79 = memref.load %arg1[%c69] : memref<98xf32, #tpu.memory_space<smem>>
    %c70 = arith.constant 70 : index
    %80 = memref.load %arg1[%c70] : memref<98xf32, #tpu.memory_space<smem>>
    %c71 = arith.constant 71 : index
    %81 = memref.load %arg1[%c71] : memref<98xf32, #tpu.memory_space<smem>>
    %c72 = arith.constant 72 : index
    %82 = memref.load %arg1[%c72] : memref<98xf32, #tpu.memory_space<smem>>
    %c73 = arith.constant 73 : index
    %83 = memref.load %arg1[%c73] : memref<98xf32, #tpu.memory_space<smem>>
    %c74 = arith.constant 74 : index
    %84 = memref.load %arg1[%c74] : memref<98xf32, #tpu.memory_space<smem>>
    %c75 = arith.constant 75 : index
    %85 = memref.load %arg1[%c75] : memref<98xf32, #tpu.memory_space<smem>>
    %c76 = arith.constant 76 : index
    %86 = memref.load %arg1[%c76] : memref<98xf32, #tpu.memory_space<smem>>
    %c77 = arith.constant 77 : index
    %87 = memref.load %arg1[%c77] : memref<98xf32, #tpu.memory_space<smem>>
    %c78 = arith.constant 78 : index
    %88 = memref.load %arg1[%c78] : memref<98xf32, #tpu.memory_space<smem>>
    %c79 = arith.constant 79 : index
    %89 = memref.load %arg1[%c79] : memref<98xf32, #tpu.memory_space<smem>>
    %c80 = arith.constant 80 : index
    %90 = memref.load %arg1[%c80] : memref<98xf32, #tpu.memory_space<smem>>
    %c81 = arith.constant 81 : index
    %91 = memref.load %arg1[%c81] : memref<98xf32, #tpu.memory_space<smem>>
    %c82 = arith.constant 82 : index
    %92 = memref.load %arg1[%c82] : memref<98xf32, #tpu.memory_space<smem>>
    %c83 = arith.constant 83 : index
    %93 = memref.load %arg1[%c83] : memref<98xf32, #tpu.memory_space<smem>>
    %c84 = arith.constant 84 : index
    %94 = memref.load %arg1[%c84] : memref<98xf32, #tpu.memory_space<smem>>
    %c85 = arith.constant 85 : index
    %95 = memref.load %arg1[%c85] : memref<98xf32, #tpu.memory_space<smem>>
    %c86 = arith.constant 86 : index
    %96 = memref.load %arg1[%c86] : memref<98xf32, #tpu.memory_space<smem>>
    %c87 = arith.constant 87 : index
    %97 = memref.load %arg1[%c87] : memref<98xf32, #tpu.memory_space<smem>>
    %c88 = arith.constant 88 : index
    %98 = memref.load %arg1[%c88] : memref<98xf32, #tpu.memory_space<smem>>
    %c89 = arith.constant 89 : index
    %99 = memref.load %arg1[%c89] : memref<98xf32, #tpu.memory_space<smem>>
    %c90 = arith.constant 90 : index
    %100 = memref.load %arg1[%c90] : memref<98xf32, #tpu.memory_space<smem>>
    %c91 = arith.constant 91 : index
    %101 = memref.load %arg1[%c91] : memref<98xf32, #tpu.memory_space<smem>>
    %c92 = arith.constant 92 : index
    %102 = memref.load %arg1[%c92] : memref<98xf32, #tpu.memory_space<smem>>
    %c93 = arith.constant 93 : index
    %103 = memref.load %arg1[%c93] : memref<98xf32, #tpu.memory_space<smem>>
    %c94 = arith.constant 94 : index
    %104 = memref.load %arg1[%c94] : memref<98xf32, #tpu.memory_space<smem>>
    %c95 = arith.constant 95 : index
    %105 = memref.load %arg1[%c95] : memref<98xf32, #tpu.memory_space<smem>>
    %c96 = arith.constant 96 : index
    %106 = memref.load %arg1[%c96] : memref<98xf32, #tpu.memory_space<smem>>
    %c97 = arith.constant 97 : index
    %107 = memref.load %arg1[%c97] : memref<98xf32, #tpu.memory_space<smem>>
    %c0_i32 = arith.constant 0 : i32
    %c2_i32 = arith.constant 2 : i32
    %108 = arith.addi %c0_i32, %c2_i32 : i32
    %c1_i32 = arith.constant 1 : i32
    scf.for %arg6 = %c0_i32 to %108 step %c1_i32  : i32 {
      %109 = arith.index_cast %arg6 : i32 to index
      %c0_18 = arith.constant 0 : index
      %c0_19 = arith.constant 0 : index
      %c0_20 = arith.constant 0 : index
      %110 = vector.load %arg3[%109, %c0_18, %c0_19, %c0_20] : memref<2x4x16x16xf32, #tpu.memory_space<vmem>>, vector<1x4x16x16xf32>
      %111 = vector.shape_cast %110 : vector<1x4x16x16xf32> to vector<4x16x16xf32>
      %cst_21 = arith.constant dense<0xFF800000> : vector<16x16xf32>
      %112 = vector.multi_reduction <maximumf>, %111, %cst_21 [0] : vector<4x16x16xf32> to vector<16x16xf32>
      %cst_22 = arith.constant dense<0.000000e+00> : vector<16x16xf32>
      %113 = vector.multi_reduction <add>, %111, %cst_22 [0] : vector<4x16x16xf32> to vector<16x16xf32>
      %cst_23 = arith.constant 4.000000e+00 : f32
      %114 = vector.broadcast %cst_23 : f32 to vector<16x16xf32>
      %115 = arith.divf %113, %114 : vector<16x16xf32>
      %c0_24 = arith.constant 0 : index
      %c3_25 = arith.constant 3 : index
      %c3_26 = arith.constant 3 : index
      %116 = vector.load %arg5[%c0_24, %c3_25, %c3_26] : memref<2x22x22xf32, #tpu.memory_space<vmem>>, vector<1x16x16xf32>
      %117 = vector.shape_cast %116 : vector<1x16x16xf32> to vector<16x16xf32>
      %118 = vector.shape_cast %112 : vector<16x16xf32> to vector<1x16x16xf32>
      tpu.vector_store %arg5[%c0_24, %c3_25, %c3_26], %118 {strides = array<i32>} : memref<2x22x22xf32, #tpu.memory_space<vmem>>, vector<1x16x16xf32>,
      %c1_27 = arith.constant 1 : index
      %c3_28 = arith.constant 3 : index
      %c3_29 = arith.constant 3 : index
      %119 = vector.load %arg5[%c1_27, %c3_28, %c3_29] : memref<2x22x22xf32, #tpu.memory_space<vmem>>, vector<1x16x16xf32>
      %120 = vector.shape_cast %119 : vector<1x16x16xf32> to vector<16x16xf32>
      %121 = vector.shape_cast %115 : vector<16x16xf32> to vector<1x16x16xf32>
      tpu.vector_store %arg5[%c1_27, %c3_28, %c3_29], %121 {strides = array<i32>} : memref<2x22x22xf32, #tpu.memory_space<vmem>>, vector<1x16x16xf32>,
      %cst_30 = arith.constant 0.000000e+00 : f32
      %122 = vector.broadcast %cst_30 : f32 to vector<16x16xf32>
      %c0_31 = arith.constant 0 : index
      %c0_32 = arith.constant 0 : index
      %c0_33 = arith.constant 0 : index
      %123 = vector.load %arg5[%c0_31, %c0_32, %c0_33] : memref<2x22x22xf32, #tpu.memory_space<vmem>>, vector<1x16x22xf32>
      %124 = vector.shape_cast %123 : vector<1x16x22xf32> to vector<16x22xf32>
      %125 = vector.extract_strided_slice %124 {offsets = [0, 0], sizes = [16, 16], strides = [1, 1]} : vector<16x22xf32> to vector<16x16xf32>
      %126 = vector.broadcast %10 : f32 to vector<16x16xf32>
      %127 = arith.mulf %126, %125 : vector<16x16xf32>
      %128 = arith.addf %122, %127 : vector<16x16xf32>
      %129 = vector.extract_strided_slice %124 {offsets = [0, 1], sizes = [16, 16], strides = [1, 1]} : vector<16x22xf32> to vector<16x16xf32>
      %130 = vector.broadcast %11 : f32 to vector<16x16xf32>
      %131 = arith.mulf %130, %129 : vector<16x16xf32>
      %132 = arith.addf %128, %131 : vector<16x16xf32>
      %133 = vector.extract_strided_slice %124 {offsets = [0, 2], sizes = [16, 16], strides = [1, 1]} : vector<16x22xf32> to vector<16x16xf32>
      %134 = vector.broadcast %12 : f32 to vector<16x16xf32>
      %135 = arith.mulf %134, %133 : vector<16x16xf32>
      %136 = arith.addf %132, %135 : vector<16x16xf32>
      %137 = vector.extract_strided_slice %124 {offsets = [0, 3], sizes = [16, 16], strides = [1, 1]} : vector<16x22xf32> to vector<16x16xf32>
      %138 = vector.broadcast %13 : f32 to vector<16x16xf32>
      %139 = arith.mulf %138, %137 : vector<16x16xf32>
      %140 = arith.addf %136, %139 : vector<16x16xf32>
      %141 = vector.extract_strided_slice %124 {offsets = [0, 4], sizes = [16, 16], strides = [1, 1]} : vector<16x22xf32> to vector<16x16xf32>
      %142 = vector.broadcast %14 : f32 to vector<16x16xf32>
      %143 = arith.mulf %142, %141 : vector<16x16xf32>
      %144 = arith.addf %140, %143 : vector<16x16xf32>
      %145 = vector.extract_strided_slice %124 {offsets = [0, 5], sizes = [16, 16], strides = [1, 1]} : vector<16x22xf32> to vector<16x16xf32>
      %146 = vector.broadcast %15 : f32 to vector<16x16xf32>
      %147 = arith.mulf %146, %145 : vector<16x16xf32>
      %148 = arith.addf %144, %147 : vector<16x16xf32>
      %149 = vector.extract_strided_slice %124 {offsets = [0, 6], sizes = [16, 16], strides = [1, 1]} : vector<16x22xf32> to vector<16x16xf32>
      %150 = vector.broadcast %16 : f32 to vector<16x16xf32>
      %151 = arith.mulf %150, %149 : vector<16x16xf32>
      %152 = arith.addf %148, %151 : vector<16x16xf32>
      %c0_34 = arith.constant 0 : index
      %c1_35 = arith.constant 1 : index
      %c0_36 = arith.constant 0 : index
      %153 = vector.load %arg5[%c0_34, %c1_35, %c0_36] : memref<2x22x22xf32, #tpu.memory_space<vmem>>, vector<1x16x22xf32>
      %154 = vector.shape_cast %153 : vector<1x16x22xf32> to vector<16x22xf32>
      %155 = vector.extract_strided_slice %154 {offsets = [0, 0], sizes = [16, 16], strides = [1, 1]} : vector<16x22xf32> to vector<16x16xf32>
      %156 = vector.broadcast %17 : f32 to vector<16x16xf32>
      %157 = arith.mulf %156, %155 : vector<16x16xf32>
      %158 = arith.addf %152, %157 : vector<16x16xf32>
      %159 = vector.extract_strided_slice %154 {offsets = [0, 1], sizes = [16, 16], strides = [1, 1]} : vector<16x22xf32> to vector<16x16xf32>
      %160 = vector.broadcast %18 : f32 to vector<16x16xf32>
      %161 = arith.mulf %160, %159 : vector<16x16xf32>
      %162 = arith.addf %158, %161 : vector<16x16xf32>
      %163 = vector.extract_strided_slice %154 {offsets = [0, 2], sizes = [16, 16], strides = [1, 1]} : vector<16x22xf32> to vector<16x16xf32>
      %164 = vector.broadcast %19 : f32 to vector<16x16xf32>
      %165 = arith.mulf %164, %163 : vector<16x16xf32>
      %166 = arith.addf %162, %165 : vector<16x16xf32>
      %167 = vector.extract_strided_slice %154 {offsets = [0, 3], sizes = [16, 16], strides = [1, 1]} : vector<16x22xf32> to vector<16x16xf32>
      %168 = vector.broadcast %20 : f32 to vector<16x16xf32>
      %169 = arith.mulf %168, %167 : vector<16x16xf32>
      %170 = arith.addf %166, %169 : vector<16x16xf32>
      %171 = vector.extract_strided_slice %154 {offsets = [0, 4], sizes = [16, 16], strides = [1, 1]} : vector<16x22xf32> to vector<16x16xf32>
      %172 = vector.broadcast %21 : f32 to vector<16x16xf32>
      %173 = arith.mulf %172, %171 : vector<16x16xf32>
      %174 = arith.addf %170, %173 : vector<16x16xf32>
      %175 = vector.extract_strided_slice %154 {offsets = [0, 5], sizes = [16, 16], strides = [1, 1]} : vector<16x22xf32> to vector<16x16xf32>
      %176 = vector.broadcast %22 : f32 to vector<16x16xf32>
      %177 = arith.mulf %176, %175 : vector<16x16xf32>
      %178 = arith.addf %174, %177 : vector<16x16xf32>
      %179 = vector.extract_strided_slice %154 {offsets = [0, 6], sizes = [16, 16], strides = [1, 1]} : vector<16x22xf32> to vector<16x16xf32>
      %180 = vector.broadcast %23 : f32 to vector<16x16xf32>
      %181 = arith.mulf %180, %179 : vector<16x16xf32>
      %182 = arith.addf %178, %181 : vector<16x16xf32>
      %c0_37 = arith.constant 0 : index
      %c2_38 = arith.constant 2 : index
      %c0_39 = arith.constant 0 : index
      %183 = vector.load %arg5[%c0_37, %c2_38, %c0_39] : memref<2x22x22xf32, #tpu.memory_space<vmem>>, vector<1x16x22xf32>
      %184 = vector.shape_cast %183 : vector<1x16x22xf32> to vector<16x22xf32>
      %185 = vector.extract_strided_slice %184 {offsets = [0, 0], sizes = [16, 16], strides = [1, 1]} : vector<16x22xf32> to vector<16x16xf32>
      %186 = vector.broadcast %24 : f32 to vector<16x16xf32>
      %187 = arith.mulf %186, %185 : vector<16x16xf32>
      %188 = arith.addf %182, %187 : vector<16x16xf32>
      %189 = vector.extract_strided_slice %184 {offsets = [0, 1], sizes = [16, 16], strides = [1, 1]} : vector<16x22xf32> to vector<16x16xf32>
      %190 = vector.broadcast %25 : f32 to vector<16x16xf32>
      %191 = arith.mulf %190, %189 : vector<16x16xf32>
      %192 = arith.addf %188, %191 : vector<16x16xf32>
      %193 = vector.extract_strided_slice %184 {offsets = [0, 2], sizes = [16, 16], strides = [1, 1]} : vector<16x22xf32> to vector<16x16xf32>
      %194 = vector.broadcast %26 : f32 to vector<16x16xf32>
      %195 = arith.mulf %194, %193 : vector<16x16xf32>
      %196 = arith.addf %192, %195 : vector<16x16xf32>
      %197 = vector.extract_strided_slice %184 {offsets = [0, 3], sizes = [16, 16], strides = [1, 1]} : vector<16x22xf32> to vector<16x16xf32>
      %198 = vector.broadcast %27 : f32 to vector<16x16xf32>
      %199 = arith.mulf %198, %197 : vector<16x16xf32>
      %200 = arith.addf %196, %199 : vector<16x16xf32>
      %201 = vector.extract_strided_slice %184 {offsets = [0, 4], sizes = [16, 16], strides = [1, 1]} : vector<16x22xf32> to vector<16x16xf32>
      %202 = vector.broadcast %28 : f32 to vector<16x16xf32>
      %203 = arith.mulf %202, %201 : vector<16x16xf32>
      %204 = arith.addf %200, %203 : vector<16x16xf32>
      %205 = vector.extract_strided_slice %184 {offsets = [0, 5], sizes = [16, 16], strides = [1, 1]} : vector<16x22xf32> to vector<16x16xf32>
      %206 = vector.broadcast %29 : f32 to vector<16x16xf32>
      %207 = arith.mulf %206, %205 : vector<16x16xf32>
      %208 = arith.addf %204, %207 : vector<16x16xf32>
      %209 = vector.extract_strided_slice %184 {offsets = [0, 6], sizes = [16, 16], strides = [1, 1]} : vector<16x22xf32> to vector<16x16xf32>
      %210 = vector.broadcast %30 : f32 to vector<16x16xf32>
      %211 = arith.mulf %210, %209 : vector<16x16xf32>
      %212 = arith.addf %208, %211 : vector<16x16xf32>
      %c0_40 = arith.constant 0 : index
      %c3_41 = arith.constant 3 : index
      %c0_42 = arith.constant 0 : index
      %213 = vector.load %arg5[%c0_40, %c3_41, %c0_42] : memref<2x22x22xf32, #tpu.memory_space<vmem>>, vector<1x16x22xf32>
      %214 = vector.shape_cast %213 : vector<1x16x22xf32> to vector<16x22xf32>
      %215 = vector.extract_strided_slice %214 {offsets = [0, 0], sizes = [16, 16], strides = [1, 1]} : vector<16x22xf32> to vector<16x16xf32>
      %216 = vector.broadcast %31 : f32 to vector<16x16xf32>
      %217 = arith.mulf %216, %215 : vector<16x16xf32>
      %218 = arith.addf %212, %217 : vector<16x16xf32>
      %219 = vector.extract_strided_slice %214 {offsets = [0, 1], sizes = [16, 16], strides = [1, 1]} : vector<16x22xf32> to vector<16x16xf32>
      %220 = vector.broadcast %32 : f32 to vector<16x16xf32>
      %221 = arith.mulf %220, %219 : vector<16x16xf32>
      %222 = arith.addf %218, %221 : vector<16x16xf32>
      %223 = vector.extract_strided_slice %214 {offsets = [0, 2], sizes = [16, 16], strides = [1, 1]} : vector<16x22xf32> to vector<16x16xf32>
      %224 = vector.broadcast %33 : f32 to vector<16x16xf32>
      %225 = arith.mulf %224, %223 : vector<16x16xf32>
      %226 = arith.addf %222, %225 : vector<16x16xf32>
      %227 = vector.extract_strided_slice %214 {offsets = [0, 3], sizes = [16, 16], strides = [1, 1]} : vector<16x22xf32> to vector<16x16xf32>
      %228 = vector.broadcast %34 : f32 to vector<16x16xf32>
      %229 = arith.mulf %228, %227 : vector<16x16xf32>
      %230 = arith.addf %226, %229 : vector<16x16xf32>
      %231 = vector.extract_strided_slice %214 {offsets = [0, 4], sizes = [16, 16], strides = [1, 1]} : vector<16x22xf32> to vector<16x16xf32>
      %232 = vector.broadcast %35 : f32 to vector<16x16xf32>
      %233 = arith.mulf %232, %231 : vector<16x16xf32>
      %234 = arith.addf %230, %233 : vector<16x16xf32>
      %235 = vector.extract_strided_slice %214 {offsets = [0, 5], sizes = [16, 16], strides = [1, 1]} : vector<16x22xf32> to vector<16x16xf32>
      %236 = vector.broadcast %36 : f32 to vector<16x16xf32>
      %237 = arith.mulf %236, %235 : vector<16x16xf32>
      %238 = arith.addf %234, %237 : vector<16x16xf32>
      %239 = vector.extract_strided_slice %214 {offsets = [0, 6], sizes = [16, 16], strides = [1, 1]} : vector<16x22xf32> to vector<16x16xf32>
      %240 = vector.broadcast %37 : f32 to vector<16x16xf32>
      %241 = arith.mulf %240, %239 : vector<16x16xf32>
      %242 = arith.addf %238, %241 : vector<16x16xf32>
      %c0_43 = arith.constant 0 : index
      %c4_44 = arith.constant 4 : index
      %c0_45 = arith.constant 0 : index
      %243 = vector.load %arg5[%c0_43, %c4_44, %c0_45] : memref<2x22x22xf32, #tpu.memory_space<vmem>>, vector<1x16x22xf32>
      %244 = vector.shape_cast %243 : vector<1x16x22xf32> to vector<16x22xf32>
      %245 = vector.extract_strided_slice %244 {offsets = [0, 0], sizes = [16, 16], strides = [1, 1]} : vector<16x22xf32> to vector<16x16xf32>
      %246 = vector.broadcast %38 : f32 to vector<16x16xf32>
      %247 = arith.mulf %246, %245 : vector<16x16xf32>
      %248 = arith.addf %242, %247 : vector<16x16xf32>
      %249 = vector.extract_strided_slice %244 {offsets = [0, 1], sizes = [16, 16], strides = [1, 1]} : vector<16x22xf32> to vector<16x16xf32>
      %250 = vector.broadcast %39 : f32 to vector<16x16xf32>
      %251 = arith.mulf %250, %249 : vector<16x16xf32>
      %252 = arith.addf %248, %251 : vector<16x16xf32>
      %253 = vector.extract_strided_slice %244 {offsets = [0, 2], sizes = [16, 16], strides = [1, 1]} : vector<16x22xf32> to vector<16x16xf32>
      %254 = vector.broadcast %40 : f32 to vector<16x16xf32>
      %255 = arith.mulf %254, %253 : vector<16x16xf32>
      %256 = arith.addf %252, %255 : vector<16x16xf32>
      %257 = vector.extract_strided_slice %244 {offsets = [0, 3], sizes = [16, 16], strides = [1, 1]} : vector<16x22xf32> to vector<16x16xf32>
      %258 = vector.broadcast %41 : f32 to vector<16x16xf32>
      %259 = arith.mulf %258, %257 : vector<16x16xf32>
      %260 = arith.addf %256, %259 : vector<16x16xf32>
      %261 = vector.extract_strided_slice %244 {offsets = [0, 4], sizes = [16, 16], strides = [1, 1]} : vector<16x22xf32> to vector<16x16xf32>
      %262 = vector.broadcast %42 : f32 to vector<16x16xf32>
      %263 = arith.mulf %262, %261 : vector<16x16xf32>
      %264 = arith.addf %260, %263 : vector<16x16xf32>
      %265 = vector.extract_strided_slice %244 {offsets = [0, 5], sizes = [16, 16], strides = [1, 1]} : vector<16x22xf32> to vector<16x16xf32>
      %266 = vector.broadcast %43 : f32 to vector<16x16xf32>
      %267 = arith.mulf %266, %265 : vector<16x16xf32>
      %268 = arith.addf %264, %267 : vector<16x16xf32>
      %269 = vector.extract_strided_slice %244 {offsets = [0, 6], sizes = [16, 16], strides = [1, 1]} : vector<16x22xf32> to vector<16x16xf32>
      %270 = vector.broadcast %44 : f32 to vector<16x16xf32>
      %271 = arith.mulf %270, %269 : vector<16x16xf32>
      %272 = arith.addf %268, %271 : vector<16x16xf32>
      %c0_46 = arith.constant 0 : index
      %c5_47 = arith.constant 5 : index
      %c0_48 = arith.constant 0 : index
      %273 = vector.load %arg5[%c0_46, %c5_47, %c0_48] : memref<2x22x22xf32, #tpu.memory_space<vmem>>, vector<1x16x22xf32>
      %274 = vector.shape_cast %273 : vector<1x16x22xf32> to vector<16x22xf32>
      %275 = vector.extract_strided_slice %274 {offsets = [0, 0], sizes = [16, 16], strides = [1, 1]} : vector<16x22xf32> to vector<16x16xf32>
      %276 = vector.broadcast %45 : f32 to vector<16x16xf32>
      %277 = arith.mulf %276, %275 : vector<16x16xf32>
      %278 = arith.addf %272, %277 : vector<16x16xf32>
      %279 = vector.extract_strided_slice %274 {offsets = [0, 1], sizes = [16, 16], strides = [1, 1]} : vector<16x22xf32> to vector<16x16xf32>
      %280 = vector.broadcast %46 : f32 to vector<16x16xf32>
      %281 = arith.mulf %280, %279 : vector<16x16xf32>
      %282 = arith.addf %278, %281 : vector<16x16xf32>
      %283 = vector.extract_strided_slice %274 {offsets = [0, 2], sizes = [16, 16], strides = [1, 1]} : vector<16x22xf32> to vector<16x16xf32>
      %284 = vector.broadcast %47 : f32 to vector<16x16xf32>
      %285 = arith.mulf %284, %283 : vector<16x16xf32>
      %286 = arith.addf %282, %285 : vector<16x16xf32>
      %287 = vector.extract_strided_slice %274 {offsets = [0, 3], sizes = [16, 16], strides = [1, 1]} : vector<16x22xf32> to vector<16x16xf32>
      %288 = vector.broadcast %48 : f32 to vector<16x16xf32>
      %289 = arith.mulf %288, %287 : vector<16x16xf32>
      %290 = arith.addf %286, %289 : vector<16x16xf32>
      %291 = vector.extract_strided_slice %274 {offsets = [0, 4], sizes = [16, 16], strides = [1, 1]} : vector<16x22xf32> to vector<16x16xf32>
      %292 = vector.broadcast %49 : f32 to vector<16x16xf32>
      %293 = arith.mulf %292, %291 : vector<16x16xf32>
      %294 = arith.addf %290, %293 : vector<16x16xf32>
      %295 = vector.extract_strided_slice %274 {offsets = [0, 5], sizes = [16, 16], strides = [1, 1]} : vector<16x22xf32> to vector<16x16xf32>
      %296 = vector.broadcast %50 : f32 to vector<16x16xf32>
      %297 = arith.mulf %296, %295 : vector<16x16xf32>
      %298 = arith.addf %294, %297 : vector<16x16xf32>
      %299 = vector.extract_strided_slice %274 {offsets = [0, 6], sizes = [16, 16], strides = [1, 1]} : vector<16x22xf32> to vector<16x16xf32>
      %300 = vector.broadcast %51 : f32 to vector<16x16xf32>
      %301 = arith.mulf %300, %299 : vector<16x16xf32>
      %302 = arith.addf %298, %301 : vector<16x16xf32>
      %c0_49 = arith.constant 0 : index
      %c6_50 = arith.constant 6 : index
      %c0_51 = arith.constant 0 : index
      %303 = vector.load %arg5[%c0_49, %c6_50, %c0_51] : memref<2x22x22xf32, #tpu.memory_space<vmem>>, vector<1x16x22xf32>
      %304 = vector.shape_cast %303 : vector<1x16x22xf32> to vector<16x22xf32>
      %305 = vector.extract_strided_slice %304 {offsets = [0, 0], sizes = [16, 16], strides = [1, 1]} : vector<16x22xf32> to vector<16x16xf32>
      %306 = vector.broadcast %52 : f32 to vector<16x16xf32>
      %307 = arith.mulf %306, %305 : vector<16x16xf32>
      %308 = arith.addf %302, %307 : vector<16x16xf32>
      %309 = vector.extract_strided_slice %304 {offsets = [0, 1], sizes = [16, 16], strides = [1, 1]} : vector<16x22xf32> to vector<16x16xf32>
      %310 = vector.broadcast %53 : f32 to vector<16x16xf32>
      %311 = arith.mulf %310, %309 : vector<16x16xf32>
      %312 = arith.addf %308, %311 : vector<16x16xf32>
      %313 = vector.extract_strided_slice %304 {offsets = [0, 2], sizes = [16, 16], strides = [1, 1]} : vector<16x22xf32> to vector<16x16xf32>
      %314 = vector.broadcast %54 : f32 to vector<16x16xf32>
      %315 = arith.mulf %314, %313 : vector<16x16xf32>
      %316 = arith.addf %312, %315 : vector<16x16xf32>
      %317 = vector.extract_strided_slice %304 {offsets = [0, 3], sizes = [16, 16], strides = [1, 1]} : vector<16x22xf32> to vector<16x16xf32>
      %318 = vector.broadcast %55 : f32 to vector<16x16xf32>
      %319 = arith.mulf %318, %317 : vector<16x16xf32>
      %320 = arith.addf %316, %319 : vector<16x16xf32>
      %321 = vector.extract_strided_slice %304 {offsets = [0, 4], sizes = [16, 16], strides = [1, 1]} : vector<16x22xf32> to vector<16x16xf32>
      %322 = vector.broadcast %56 : f32 to vector<16x16xf32>
      %323 = arith.mulf %322, %321 : vector<16x16xf32>
      %324 = arith.addf %320, %323 : vector<16x16xf32>
      %325 = vector.extract_strided_slice %304 {offsets = [0, 5], sizes = [16, 16], strides = [1, 1]} : vector<16x22xf32> to vector<16x16xf32>
      %326 = vector.broadcast %57 : f32 to vector<16x16xf32>
      %327 = arith.mulf %326, %325 : vector<16x16xf32>
      %328 = arith.addf %324, %327 : vector<16x16xf32>
      %329 = vector.extract_strided_slice %304 {offsets = [0, 6], sizes = [16, 16], strides = [1, 1]} : vector<16x22xf32> to vector<16x16xf32>
      %330 = vector.broadcast %58 : f32 to vector<16x16xf32>
      %331 = arith.mulf %330, %329 : vector<16x16xf32>
      %332 = arith.addf %328, %331 : vector<16x16xf32>
      %c1_52 = arith.constant 1 : index
      %c0_53 = arith.constant 0 : index
      %c0_54 = arith.constant 0 : index
      %333 = vector.load %arg5[%c1_52, %c0_53, %c0_54] : memref<2x22x22xf32, #tpu.memory_space<vmem>>, vector<1x16x22xf32>
      %334 = vector.shape_cast %333 : vector<1x16x22xf32> to vector<16x22xf32>
      %335 = vector.extract_strided_slice %334 {offsets = [0, 0], sizes = [16, 16], strides = [1, 1]} : vector<16x22xf32> to vector<16x16xf32>
      %336 = vector.broadcast %59 : f32 to vector<16x16xf32>
      %337 = arith.mulf %336, %335 : vector<16x16xf32>
      %338 = arith.addf %332, %337 : vector<16x16xf32>
      %339 = vector.extract_strided_slice %334 {offsets = [0, 1], sizes = [16, 16], strides = [1, 1]} : vector<16x22xf32> to vector<16x16xf32>
      %340 = vector.broadcast %60 : f32 to vector<16x16xf32>
      %341 = arith.mulf %340, %339 : vector<16x16xf32>
      %342 = arith.addf %338, %341 : vector<16x16xf32>
      %343 = vector.extract_strided_slice %334 {offsets = [0, 2], sizes = [16, 16], strides = [1, 1]} : vector<16x22xf32> to vector<16x16xf32>
      %344 = vector.broadcast %61 : f32 to vector<16x16xf32>
      %345 = arith.mulf %344, %343 : vector<16x16xf32>
      %346 = arith.addf %342, %345 : vector<16x16xf32>
      %347 = vector.extract_strided_slice %334 {offsets = [0, 3], sizes = [16, 16], strides = [1, 1]} : vector<16x22xf32> to vector<16x16xf32>
      %348 = vector.broadcast %62 : f32 to vector<16x16xf32>
      %349 = arith.mulf %348, %347 : vector<16x16xf32>
      %350 = arith.addf %346, %349 : vector<16x16xf32>
      %351 = vector.extract_strided_slice %334 {offsets = [0, 4], sizes = [16, 16], strides = [1, 1]} : vector<16x22xf32> to vector<16x16xf32>
      %352 = vector.broadcast %63 : f32 to vector<16x16xf32>
      %353 = arith.mulf %352, %351 : vector<16x16xf32>
      %354 = arith.addf %350, %353 : vector<16x16xf32>
      %355 = vector.extract_strided_slice %334 {offsets = [0, 5], sizes = [16, 16], strides = [1, 1]} : vector<16x22xf32> to vector<16x16xf32>
      %356 = vector.broadcast %64 : f32 to vector<16x16xf32>
      %357 = arith.mulf %356, %355 : vector<16x16xf32>
      %358 = arith.addf %354, %357 : vector<16x16xf32>
      %359 = vector.extract_strided_slice %334 {offsets = [0, 6], sizes = [16, 16], strides = [1, 1]} : vector<16x22xf32> to vector<16x16xf32>
      %360 = vector.broadcast %65 : f32 to vector<16x16xf32>
      %361 = arith.mulf %360, %359 : vector<16x16xf32>
      %362 = arith.addf %358, %361 : vector<16x16xf32>
      %c1_55 = arith.constant 1 : index
      %c1_56 = arith.constant 1 : index
      %c0_57 = arith.constant 0 : index
      %363 = vector.load %arg5[%c1_55, %c1_56, %c0_57] : memref<2x22x22xf32, #tpu.memory_space<vmem>>, vector<1x16x22xf32>
      %364 = vector.shape_cast %363 : vector<1x16x22xf32> to vector<16x22xf32>
      %365 = vector.extract_strided_slice %364 {offsets = [0, 0], sizes = [16, 16], strides = [1, 1]} : vector<16x22xf32> to vector<16x16xf32>
      %366 = vector.broadcast %66 : f32 to vector<16x16xf32>
      %367 = arith.mulf %366, %365 : vector<16x16xf32>
      %368 = arith.addf %362, %367 : vector<16x16xf32>
      %369 = vector.extract_strided_slice %364 {offsets = [0, 1], sizes = [16, 16], strides = [1, 1]} : vector<16x22xf32> to vector<16x16xf32>
      %370 = vector.broadcast %67 : f32 to vector<16x16xf32>
      %371 = arith.mulf %370, %369 : vector<16x16xf32>
      %372 = arith.addf %368, %371 : vector<16x16xf32>
      %373 = vector.extract_strided_slice %364 {offsets = [0, 2], sizes = [16, 16], strides = [1, 1]} : vector<16x22xf32> to vector<16x16xf32>
      %374 = vector.broadcast %68 : f32 to vector<16x16xf32>
      %375 = arith.mulf %374, %373 : vector<16x16xf32>
      %376 = arith.addf %372, %375 : vector<16x16xf32>
      %377 = vector.extract_strided_slice %364 {offsets = [0, 3], sizes = [16, 16], strides = [1, 1]} : vector<16x22xf32> to vector<16x16xf32>
      %378 = vector.broadcast %69 : f32 to vector<16x16xf32>
      %379 = arith.mulf %378, %377 : vector<16x16xf32>
      %380 = arith.addf %376, %379 : vector<16x16xf32>
      %381 = vector.extract_strided_slice %364 {offsets = [0, 4], sizes = [16, 16], strides = [1, 1]} : vector<16x22xf32> to vector<16x16xf32>
      %382 = vector.broadcast %70 : f32 to vector<16x16xf32>
      %383 = arith.mulf %382, %381 : vector<16x16xf32>
      %384 = arith.addf %380, %383 : vector<16x16xf32>
      %385 = vector.extract_strided_slice %364 {offsets = [0, 5], sizes = [16, 16], strides = [1, 1]} : vector<16x22xf32> to vector<16x16xf32>
      %386 = vector.broadcast %71 : f32 to vector<16x16xf32>
      %387 = arith.mulf %386, %385 : vector<16x16xf32>
      %388 = arith.addf %384, %387 : vector<16x16xf32>
      %389 = vector.extract_strided_slice %364 {offsets = [0, 6], sizes = [16, 16], strides = [1, 1]} : vector<16x22xf32> to vector<16x16xf32>
      %390 = vector.broadcast %72 : f32 to vector<16x16xf32>
      %391 = arith.mulf %390, %389 : vector<16x16xf32>
      %392 = arith.addf %388, %391 : vector<16x16xf32>
      %c1_58 = arith.constant 1 : index
      %c2_59 = arith.constant 2 : index
      %c0_60 = arith.constant 0 : index
      %393 = vector.load %arg5[%c1_58, %c2_59, %c0_60] : memref<2x22x22xf32, #tpu.memory_space<vmem>>, vector<1x16x22xf32>
      %394 = vector.shape_cast %393 : vector<1x16x22xf32> to vector<16x22xf32>
      %395 = vector.extract_strided_slice %394 {offsets = [0, 0], sizes = [16, 16], strides = [1, 1]} : vector<16x22xf32> to vector<16x16xf32>
      %396 = vector.broadcast %73 : f32 to vector<16x16xf32>
      %397 = arith.mulf %396, %395 : vector<16x16xf32>
      %398 = arith.addf %392, %397 : vector<16x16xf32>
      %399 = vector.extract_strided_slice %394 {offsets = [0, 1], sizes = [16, 16], strides = [1, 1]} : vector<16x22xf32> to vector<16x16xf32>
      %400 = vector.broadcast %74 : f32 to vector<16x16xf32>
      %401 = arith.mulf %400, %399 : vector<16x16xf32>
      %402 = arith.addf %398, %401 : vector<16x16xf32>
      %403 = vector.extract_strided_slice %394 {offsets = [0, 2], sizes = [16, 16], strides = [1, 1]} : vector<16x22xf32> to vector<16x16xf32>
      %404 = vector.broadcast %75 : f32 to vector<16x16xf32>
      %405 = arith.mulf %404, %403 : vector<16x16xf32>
      %406 = arith.addf %402, %405 : vector<16x16xf32>
      %407 = vector.extract_strided_slice %394 {offsets = [0, 3], sizes = [16, 16], strides = [1, 1]} : vector<16x22xf32> to vector<16x16xf32>
      %408 = vector.broadcast %76 : f32 to vector<16x16xf32>
      %409 = arith.mulf %408, %407 : vector<16x16xf32>
      %410 = arith.addf %406, %409 : vector<16x16xf32>
      %411 = vector.extract_strided_slice %394 {offsets = [0, 4], sizes = [16, 16], strides = [1, 1]} : vector<16x22xf32> to vector<16x16xf32>
      %412 = vector.broadcast %77 : f32 to vector<16x16xf32>
      %413 = arith.mulf %412, %411 : vector<16x16xf32>
      %414 = arith.addf %410, %413 : vector<16x16xf32>
      %415 = vector.extract_strided_slice %394 {offsets = [0, 5], sizes = [16, 16], strides = [1, 1]} : vector<16x22xf32> to vector<16x16xf32>
      %416 = vector.broadcast %78 : f32 to vector<16x16xf32>
      %417 = arith.mulf %416, %415 : vector<16x16xf32>
      %418 = arith.addf %414, %417 : vector<16x16xf32>
      %419 = vector.extract_strided_slice %394 {offsets = [0, 6], sizes = [16, 16], strides = [1, 1]} : vector<16x22xf32> to vector<16x16xf32>
      %420 = vector.broadcast %79 : f32 to vector<16x16xf32>
      %421 = arith.mulf %420, %419 : vector<16x16xf32>
      %422 = arith.addf %418, %421 : vector<16x16xf32>
      %c1_61 = arith.constant 1 : index
      %c3_62 = arith.constant 3 : index
      %c0_63 = arith.constant 0 : index
      %423 = vector.load %arg5[%c1_61, %c3_62, %c0_63] : memref<2x22x22xf32, #tpu.memory_space<vmem>>, vector<1x16x22xf32>
      %424 = vector.shape_cast %423 : vector<1x16x22xf32> to vector<16x22xf32>
      %425 = vector.extract_strided_slice %424 {offsets = [0, 0], sizes = [16, 16], strides = [1, 1]} : vector<16x22xf32> to vector<16x16xf32>
      %426 = vector.broadcast %80 : f32 to vector<16x16xf32>
      %427 = arith.mulf %426, %425 : vector<16x16xf32>
      %428 = arith.addf %422, %427 : vector<16x16xf32>
      %429 = vector.extract_strided_slice %424 {offsets = [0, 1], sizes = [16, 16], strides = [1, 1]} : vector<16x22xf32> to vector<16x16xf32>
      %430 = vector.broadcast %81 : f32 to vector<16x16xf32>
      %431 = arith.mulf %430, %429 : vector<16x16xf32>
      %432 = arith.addf %428, %431 : vector<16x16xf32>
      %433 = vector.extract_strided_slice %424 {offsets = [0, 2], sizes = [16, 16], strides = [1, 1]} : vector<16x22xf32> to vector<16x16xf32>
      %434 = vector.broadcast %82 : f32 to vector<16x16xf32>
      %435 = arith.mulf %434, %433 : vector<16x16xf32>
      %436 = arith.addf %432, %435 : vector<16x16xf32>
      %437 = vector.extract_strided_slice %424 {offsets = [0, 3], sizes = [16, 16], strides = [1, 1]} : vector<16x22xf32> to vector<16x16xf32>
      %438 = vector.broadcast %83 : f32 to vector<16x16xf32>
      %439 = arith.mulf %438, %437 : vector<16x16xf32>
      %440 = arith.addf %436, %439 : vector<16x16xf32>
      %441 = vector.extract_strided_slice %424 {offsets = [0, 4], sizes = [16, 16], strides = [1, 1]} : vector<16x22xf32> to vector<16x16xf32>
      %442 = vector.broadcast %84 : f32 to vector<16x16xf32>
      %443 = arith.mulf %442, %441 : vector<16x16xf32>
      %444 = arith.addf %440, %443 : vector<16x16xf32>
      %445 = vector.extract_strided_slice %424 {offsets = [0, 5], sizes = [16, 16], strides = [1, 1]} : vector<16x22xf32> to vector<16x16xf32>
      %446 = vector.broadcast %85 : f32 to vector<16x16xf32>
      %447 = arith.mulf %446, %445 : vector<16x16xf32>
      %448 = arith.addf %444, %447 : vector<16x16xf32>
      %449 = vector.extract_strided_slice %424 {offsets = [0, 6], sizes = [16, 16], strides = [1, 1]} : vector<16x22xf32> to vector<16x16xf32>
      %450 = vector.broadcast %86 : f32 to vector<16x16xf32>
      %451 = arith.mulf %450, %449 : vector<16x16xf32>
      %452 = arith.addf %448, %451 : vector<16x16xf32>
      %c1_64 = arith.constant 1 : index
      %c4_65 = arith.constant 4 : index
      %c0_66 = arith.constant 0 : index
      %453 = vector.load %arg5[%c1_64, %c4_65, %c0_66] : memref<2x22x22xf32, #tpu.memory_space<vmem>>, vector<1x16x22xf32>
      %454 = vector.shape_cast %453 : vector<1x16x22xf32> to vector<16x22xf32>
      %455 = vector.extract_strided_slice %454 {offsets = [0, 0], sizes = [16, 16], strides = [1, 1]} : vector<16x22xf32> to vector<16x16xf32>
      %456 = vector.broadcast %87 : f32 to vector<16x16xf32>
      %457 = arith.mulf %456, %455 : vector<16x16xf32>
      %458 = arith.addf %452, %457 : vector<16x16xf32>
      %459 = vector.extract_strided_slice %454 {offsets = [0, 1], sizes = [16, 16], strides = [1, 1]} : vector<16x22xf32> to vector<16x16xf32>
      %460 = vector.broadcast %88 : f32 to vector<16x16xf32>
      %461 = arith.mulf %460, %459 : vector<16x16xf32>
      %462 = arith.addf %458, %461 : vector<16x16xf32>
      %463 = vector.extract_strided_slice %454 {offsets = [0, 2], sizes = [16, 16], strides = [1, 1]} : vector<16x22xf32> to vector<16x16xf32>
      %464 = vector.broadcast %89 : f32 to vector<16x16xf32>
      %465 = arith.mulf %464, %463 : vector<16x16xf32>
      %466 = arith.addf %462, %465 : vector<16x16xf32>
      %467 = vector.extract_strided_slice %454 {offsets = [0, 3], sizes = [16, 16], strides = [1, 1]} : vector<16x22xf32> to vector<16x16xf32>
      %468 = vector.broadcast %90 : f32 to vector<16x16xf32>
      %469 = arith.mulf %468, %467 : vector<16x16xf32>
      %470 = arith.addf %466, %469 : vector<16x16xf32>
      %471 = vector.extract_strided_slice %454 {offsets = [0, 4], sizes = [16, 16], strides = [1, 1]} : vector<16x22xf32> to vector<16x16xf32>
      %472 = vector.broadcast %91 : f32 to vector<16x16xf32>
      %473 = arith.mulf %472, %471 : vector<16x16xf32>
      %474 = arith.addf %470, %473 : vector<16x16xf32>
      %475 = vector.extract_strided_slice %454 {offsets = [0, 5], sizes = [16, 16], strides = [1, 1]} : vector<16x22xf32> to vector<16x16xf32>
      %476 = vector.broadcast %92 : f32 to vector<16x16xf32>
      %477 = arith.mulf %476, %475 : vector<16x16xf32>
      %478 = arith.addf %474, %477 : vector<16x16xf32>
      %479 = vector.extract_strided_slice %454 {offsets = [0, 6], sizes = [16, 16], strides = [1, 1]} : vector<16x22xf32> to vector<16x16xf32>
      %480 = vector.broadcast %93 : f32 to vector<16x16xf32>
      %481 = arith.mulf %480, %479 : vector<16x16xf32>
      %482 = arith.addf %478, %481 : vector<16x16xf32>
      %c1_67 = arith.constant 1 : index
      %c5_68 = arith.constant 5 : index
      %c0_69 = arith.constant 0 : index
      %483 = vector.load %arg5[%c1_67, %c5_68, %c0_69] : memref<2x22x22xf32, #tpu.memory_space<vmem>>, vector<1x16x22xf32>
      %484 = vector.shape_cast %483 : vector<1x16x22xf32> to vector<16x22xf32>
      %485 = vector.extract_strided_slice %484 {offsets = [0, 0], sizes = [16, 16], strides = [1, 1]} : vector<16x22xf32> to vector<16x16xf32>
      %486 = vector.broadcast %94 : f32 to vector<16x16xf32>
      %487 = arith.mulf %486, %485 : vector<16x16xf32>
      %488 = arith.addf %482, %487 : vector<16x16xf32>
      %489 = vector.extract_strided_slice %484 {offsets = [0, 1], sizes = [16, 16], strides = [1, 1]} : vector<16x22xf32> to vector<16x16xf32>
      %490 = vector.broadcast %95 : f32 to vector<16x16xf32>
      %491 = arith.mulf %490, %489 : vector<16x16xf32>
      %492 = arith.addf %488, %491 : vector<16x16xf32>
      %493 = vector.extract_strided_slice %484 {offsets = [0, 2], sizes = [16, 16], strides = [1, 1]} : vector<16x22xf32> to vector<16x16xf32>
      %494 = vector.broadcast %96 : f32 to vector<16x16xf32>
      %495 = arith.mulf %494, %493 : vector<16x16xf32>
      %496 = arith.addf %492, %495 : vector<16x16xf32>
      %497 = vector.extract_strided_slice %484 {offsets = [0, 3], sizes = [16, 16], strides = [1, 1]} : vector<16x22xf32> to vector<16x16xf32>
      %498 = vector.broadcast %97 : f32 to vector<16x16xf32>
      %499 = arith.mulf %498, %497 : vector<16x16xf32>
      %500 = arith.addf %496, %499 : vector<16x16xf32>
      %501 = vector.extract_strided_slice %484 {offsets = [0, 4], sizes = [16, 16], strides = [1, 1]} : vector<16x22xf32> to vector<16x16xf32>
      %502 = vector.broadcast %98 : f32 to vector<16x16xf32>
      %503 = arith.mulf %502, %501 : vector<16x16xf32>
      %504 = arith.addf %500, %503 : vector<16x16xf32>
      %505 = vector.extract_strided_slice %484 {offsets = [0, 5], sizes = [16, 16], strides = [1, 1]} : vector<16x22xf32> to vector<16x16xf32>
      %506 = vector.broadcast %99 : f32 to vector<16x16xf32>
      %507 = arith.mulf %506, %505 : vector<16x16xf32>
      %508 = arith.addf %504, %507 : vector<16x16xf32>
      %509 = vector.extract_strided_slice %484 {offsets = [0, 6], sizes = [16, 16], strides = [1, 1]} : vector<16x22xf32> to vector<16x16xf32>
      %510 = vector.broadcast %100 : f32 to vector<16x16xf32>
      %511 = arith.mulf %510, %509 : vector<16x16xf32>
      %512 = arith.addf %508, %511 : vector<16x16xf32>
      %c1_70 = arith.constant 1 : index
      %c6_71 = arith.constant 6 : index
      %c0_72 = arith.constant 0 : index
      %513 = vector.load %arg5[%c1_70, %c6_71, %c0_72] : memref<2x22x22xf32, #tpu.memory_space<vmem>>, vector<1x16x22xf32>
      %514 = vector.shape_cast %513 : vector<1x16x22xf32> to vector<16x22xf32>
      %515 = vector.extract_strided_slice %514 {offsets = [0, 0], sizes = [16, 16], strides = [1, 1]} : vector<16x22xf32> to vector<16x16xf32>
      %516 = vector.broadcast %101 : f32 to vector<16x16xf32>
      %517 = arith.mulf %516, %515 : vector<16x16xf32>
      %518 = arith.addf %512, %517 : vector<16x16xf32>
      %519 = vector.extract_strided_slice %514 {offsets = [0, 1], sizes = [16, 16], strides = [1, 1]} : vector<16x22xf32> to vector<16x16xf32>
      %520 = vector.broadcast %102 : f32 to vector<16x16xf32>
      %521 = arith.mulf %520, %519 : vector<16x16xf32>
      %522 = arith.addf %518, %521 : vector<16x16xf32>
      %523 = vector.extract_strided_slice %514 {offsets = [0, 2], sizes = [16, 16], strides = [1, 1]} : vector<16x22xf32> to vector<16x16xf32>
      %524 = vector.broadcast %103 : f32 to vector<16x16xf32>
      %525 = arith.mulf %524, %523 : vector<16x16xf32>
      %526 = arith.addf %522, %525 : vector<16x16xf32>
      %527 = vector.extract_strided_slice %514 {offsets = [0, 3], sizes = [16, 16], strides = [1, 1]} : vector<16x22xf32> to vector<16x16xf32>
      %528 = vector.broadcast %104 : f32 to vector<16x16xf32>
      %529 = arith.mulf %528, %527 : vector<16x16xf32>
      %530 = arith.addf %526, %529 : vector<16x16xf32>
      %531 = vector.extract_strided_slice %514 {offsets = [0, 4], sizes = [16, 16], strides = [1, 1]} : vector<16x22xf32> to vector<16x16xf32>
      %532 = vector.broadcast %105 : f32 to vector<16x16xf32>
      %533 = arith.mulf %532, %531 : vector<16x16xf32>
      %534 = arith.addf %530, %533 : vector<16x16xf32>
      %535 = vector.extract_strided_slice %514 {offsets = [0, 5], sizes = [16, 16], strides = [1, 1]} : vector<16x22xf32> to vector<16x16xf32>
      %536 = vector.broadcast %106 : f32 to vector<16x16xf32>
      %537 = arith.mulf %536, %535 : vector<16x16xf32>
      %538 = arith.addf %534, %537 : vector<16x16xf32>
      %539 = vector.extract_strided_slice %514 {offsets = [0, 6], sizes = [16, 16], strides = [1, 1]} : vector<16x22xf32> to vector<16x16xf32>
      %540 = vector.broadcast %107 : f32 to vector<16x16xf32>
      %541 = arith.mulf %540, %539 : vector<16x16xf32>
      %542 = arith.addf %538, %541 : vector<16x16xf32>
      %543 = vector.broadcast %8 : f32 to vector<16x16xf32>
      %544 = arith.mulf %542, %543 : vector<16x16xf32>
      %545 = vector.broadcast %9 : f32 to vector<16x16xf32>
      %546 = arith.addf %544, %545 : vector<16x16xf32>
      %cst_73 = arith.constant 0.000000e+00 : f32
      %547 = vector.broadcast %cst_73 : f32 to vector<16x16xf32>
      %548 = arith.subf %547, %546 : vector<16x16xf32>
      %549 = math.exp %548 : vector<16x16xf32>
      %cst_74 = arith.constant 1.000000e+00 : f32
      %550 = vector.broadcast %cst_74 : f32 to vector<16x16xf32>
      %551 = arith.addf %550, %549 : vector<16x16xf32>
      %552 = tpu.reciprocal %551 {approx = true} : vector<16x16xf32> -> vector<16x16xf32>
      %553 = arith.index_cast %arg6 : i32 to index
      %c0_75 = arith.constant 0 : index
      %c0_76 = arith.constant 0 : index
      %c0_77 = arith.constant 0 : index
      %554 = vector.load %arg3[%553, %c0_75, %c0_76, %c0_77] : memref<2x4x16x16xf32, #tpu.memory_space<vmem>>, vector<1x4x16x16xf32>
      %555 = vector.shape_cast %554 : vector<1x4x16x16xf32> to vector<4x16x16xf32>
      %556 = vector.shape_cast %552 : vector<16x16xf32> to vector<1x16x16xf32>
      %557 = vector.broadcast %556 : vector<1x16x16xf32> to vector<4x16x16xf32>
      %558 = arith.mulf %555, %557 : vector<4x16x16xf32>
      %559 = arith.index_cast %arg6 : i32 to index
      %c0_78 = arith.constant 0 : index
      %c0_79 = arith.constant 0 : index
      %c0_80 = arith.constant 0 : index
      %560 = vector.load %arg4[%559, %c0_78, %c0_79, %c0_80] : memref<2x4x16x16xf32, #tpu.memory_space<vmem>>, vector<1x4x16x16xf32>
      %561 = vector.shape_cast %560 : vector<1x4x16x16xf32> to vector<4x16x16xf32>
      %562 = vector.shape_cast %558 : vector<4x16x16xf32> to vector<1x4x16x16xf32>
      tpu.vector_store %arg4[%559, %c0_78, %c0_79, %c0_80], %562 {strides = array<i32>} : memref<2x4x16x16xf32, #tpu.memory_space<vmem>>, vector<1x4x16x16xf32>,
    }
    %c2_i32_17 = arith.constant 2 : i32
    return
  }
  func.func @transform_0(%arg0: i32) -> i32 {
    %c0_i32 = arith.constant 0 : i32
    %c0_i32_0 = arith.constant 0 : i32
    return %c0_i32 : i32
  }
  func.func @transform_1(%arg0: i32) -> i32 {
    %c0_i32 = arith.constant 0 : i32
    %c0_i32_0 = arith.constant 0 : i32
    return %c0_i32 : i32
  }
  func.func @transform_2(%arg0: i32) -> (i32, i32, i32, i32) {
    %c0_i32 = arith.constant 0 : i32
    %c0_i32_0 = arith.constant 0 : i32
    %c0_i32_1 = arith.constant 0 : i32
    %c0_i32_2 = arith.constant 0 : i32
    return %arg0, %c0_i32, %c0_i32_0, %c0_i32_1 : i32, i32, i32, i32
  }
  func.func @transform_3(%arg0: i32) -> (i32, i32, i32, i32) {
    %c0_i32 = arith.constant 0 : i32
    %c0_i32_0 = arith.constant 0 : i32
    %c0_i32_1 = arith.constant 0 : i32
    %c0_i32_2 = arith.constant 0 : i32
    return %arg0, %c0_i32, %c0_i32_0, %c0_i32_1 : i32, i32, i32, i32
  }
}

</mosaic_0001>

<bundles_post_ra>
// kernel: tpu_custom_call.1
= control target key start
LH: loop header
LB: loop body
LE: loop exit
PB: predicated region body
PF: predicated region fallthrough
CT: control target
= control target key end

     0   :  { %s2567_s0 = inlined_call_operand.hbm [shape: f32[98], index: 0, kind: input, shape index: {}]   ;;  %s2568_s1 = inlined_call_operand.vmem [shape: f32[2], index: 1, kind: input, shape index: {}]   ;;  %s2569_s2 = inlined_call_operand.hbm [shape: f32[2,4,16,16], index: 2, kind: input, shape index: {}]   ;;  %s2570_s3 = inlined_call_operand.hbm [shape: f32[2,4,16,16], index: 3, kind: output, shape index: {}]  }
   0x1   :  { %2589 = sst [smem:[#allocation97_spill]] %s2570_s3 }
   0x2   :  { %8 = vsyncpa [#allocation6], 0 }
   0x3   :  { %9 = vsyncpa [#allocation7], 0 }
   0x4   :  { %10 = vsyncpa [#allocation4], 0 }
   0x5   :  { %11 = vsyncpa [#allocation5], 0  ;;  %s26_s14 = sshll.u32 %s2568_s1, 4  ;;  %s1631_s17 = scalar_lea.hbm %s2567_s0, 16  ;;  %s27_s14 = int_to_ptr.vmem [resolvable:$true] %s26_s14 }
   0x6   :  { %p1632_p0 = scmp.ne.s32.totalorder %s2567_s0, %s1631_s17  ;;  %p1635_p1 = scmp.lt.u32.totalorder %s1631_s17, %s2567_s0 }
   0x8   :  { %p1637_p2 = pnand %p1635_p1, %p1632_p0 }
   0xa   :  { %1640 = shalt.err (!%p1637_p2)
}
   0xb   :  { %s1713_s22 = smov [#allocation3]   ;;  %s1641_s1 = scalar_lea.vmem %s27_s14, 16 }
   0xc   :  { %19 = dma.hbm_to_smem %s2567_s0, 16, %s1713_s22, [#allocation6]  }
   0xd   :  { %p1642_p3 = scmp.ne.s32.totalorder %s27_s14, %s1641_s1  ;;  %p1646_p4 = scmp.lt.s32.totalorder %s27_s14, %s27_s14 }
   0xe   :  { %p1647_p5 = scmp.lt.s32.totalorder %s1641_s1, %s1641_s1 }
  0x10   :  { %p1648_p6 = por %p1647_p5, %p1646_p4 }
  0x12   :  { %p1649_p7 = pnand %p1648_p6, %p1642_p3 }
  0x14   :  { %1652 = shalt.err (!%p1649_p7)
}
  0x15   :  { %s1714_s25 = smov [#allocation8]   ;;  %s1715_s26 = smov [#allocation9]  }
  0x16   :  { %29 = dma.vmem_to_smem %s27_s14, 16, %s1714_s25, [#allocation7]  }
  0x17   :  { %s35_s27 = sshll.u32 %s1715_s26, 4  ;;  %s1653_s30 = scalar_lea.hbm %s2569_s2, 2048  ;;  %s36_s27 = int_to_ptr.vmem [resolvable:$true] %s35_s27 }
  0x18   :  { %p1654_p8 = scmp.ne.s32.totalorder %s2569_s2, %s1653_s30  ;;  %p1657_p9 = scmp.lt.u32.totalorder %s1653_s30, %s2569_s2 }
  0x1a   :  { %p1659_p10 = pnand %p1657_p9, %p1654_p8 }
  0x1c   :  { %1662 = shalt.err (!%p1659_p10)
}
  0x1d   :  { %s1663_s7 = scalar_lea.vmem %s36_s27, 2048  ;;  %p1668_p12 = scmp.lt.s32.totalorder %s36_s27, %s36_s27 }
  0x1e   :  { %p1664_p11 = scmp.ne.s32.totalorder %s36_s27, %s1663_s7  ;;  %p1669_p13 = scmp.lt.s32.totalorder %s1663_s7, %s1663_s7 }
  0x20   :  { %p1670_p0 = por %p1669_p13, %p1668_p12 }
  0x22   :  { %p1671_p1 = pnand %p1670_p0, %p1664_p11 }
  0x24   :  { %1674 = shalt.err (!%p1671_p1)
}
  0x25   :  { %s2571_s8 = smov 128   ;;  %s2572_s9 = smov 8  }
  0x26   :  { %41 = dma.hbm_to_vmem [thread:$0]  %s2569_s2, 2048, %s36_s27, [#allocation4], %s2571_s8, %s2571_s8, %s2572_s9  }
  0x27   :  { %1701 = dma.done.wait [#allocation6], 16  }
  0x28   :  { %1702 = vsyncadd [#allocation6], 4294967280 }
  0x29   :  { %1703 = dma.done.wait [#allocation7], 16  }
  0x2a   :  { %1704 = vsyncadd [#allocation7], 4294967280 }
  0x2b   :  { %1705 = dma.done.wait [#allocation4], 2048  }
  0x2c   :  { %1706 = vsyncadd [#allocation4], 4294965248 }
  0x2d   :  { %51 = sfence }
  0x2e   :  { %vm52_vm0 = vcmask 174080   ;;  %s1777_s12 = sld [smem:[#allocation8]]  ;;  %s1779_s13 = sld [smem:[#allocation8 + $0x1]]  ;;  %v1718_v0 = vmov 0.0   ;;  %vm57_vm1 = vcmask 23552   ;;  %vm60_vm2 = vcmask 21504  }
  0x2f   :  { %53 = vst.msk [vmem:[#allocation2] sm:$0x7] %vm52_vm0, %v1718_v0  ;;  %54 = vst.msk [vmem:[#allocation2 + $0x18] sm:$0x7] %vm52_vm0, %v1718_v0  ;;  %s1781_s14 = sld [smem:[#allocation3]]  ;;  %s1783_s2 = sld [smem:[#allocation3 + $0x1]] }
  0x30   :  { %55 = vst.msk [vmem:[#allocation2 + $0x13] sm:$0x7] %vm52_vm0, %v1718_v0  ;;  %56 = vst.msk [vmem:[#allocation2 + $0x2b] sm:$0x7] %vm52_vm0, %v1718_v0  ;;  %s1785_s15 = sld [smem:[#allocation3 + $0x2]]  ;;  %s1787_s16 = sld [smem:[#allocation3 + $0x3]] }
  0x31   :  { %58 = vst.msk [vmem:[#allocation2] sm:$0xff] %vm57_vm1, %v1718_v0  ;;  %59 = vst.msk [vmem:[#allocation2 + $0x8] sm:$0xff] %vm57_vm1, %v1718_v0  ;;  %vm65_vm3 = vcmask 179352   ;;  %vm68_vm4 = vcmask 177304   ;;  %s1789_s17 = sld [smem:[#allocation3 + $0x4]]  ;;  %s1791_s18 = sld [smem:[#allocation3 + $0x5]] }
  0x32   :  { %62 = vst.msk [vmem:[#allocation2 + $0x18] sm:$0xff] %vm57_vm1, %v1718_v0  ;;  %63 = vst.msk [vmem:[#allocation2 + $0x20] sm:$0xff] %vm57_vm1, %v1718_v0  ;;  %s1793_s19 = sld [smem:[#allocation3 + $0x6]]  ;;  %s1795_s20 = sld [smem:[#allocation3 + $0x7]] }
  0x33   :  { %61 = vst.msk [vmem:[#allocation2 + $0x10] sm:$0x3f] %vm60_vm2, %v1718_v0  ;;  %64 = vst.msk [vmem:[#allocation2 + $0x28] sm:$0x3f] %vm60_vm2, %v1718_v0  ;;  %s1797_s21 = sld [smem:[#allocation3 + $0x8]]  ;;  %s1799_s22 = sld [smem:[#allocation3 + $0x9]] }
  0x34   :  { %2590 = sst [smem:[#allocation15_spill]] %s1777_s12  ;;  %66 = vst.msk [vmem:[#allocation2] sm:$0xff] %vm65_vm3, %v1718_v0  ;;  %67 = vst.msk [vmem:[#allocation2 + $0x8] sm:$0xff] %vm65_vm3, %v1718_v0  ;;  %s1801_s23 = sld [smem:[#allocation3 + $0xa]] }
  0x35   :  { %2591 = sst [smem:[#allocation16_spill]] %s1779_s13  ;;  %70 = vst.msk [vmem:[#allocation2 + $0x18] sm:$0xff] %vm65_vm3, %v1718_v0  ;;  %71 = vst.msk [vmem:[#allocation2 + $0x20] sm:$0xff] %vm65_vm3, %v1718_v0  ;;  %s1803_s24 = sld [smem:[#allocation3 + $0xb]] }
  0x36   :  { %2592 = sst [smem:[#allocation17_spill]] %s1781_s14  ;;  %69 = vst.msk [vmem:[#allocation2 + $0x10] sm:$0x3f] %vm68_vm4, %v1718_v0  ;;  %72 = vst.msk [vmem:[#allocation2 + $0x28] sm:$0x3f] %vm68_vm4, %v1718_v0  ;;  %s1805_s1 = sld [smem:[#allocation3 + $0xc]] }
  0x37   :  { %2593 = sst [smem:[#allocation18_spill]] %s1783_s2  ;;  %s1807_s25 = sld [smem:[#allocation3 + $0xd]] }
  0x38   :  { %2594 = sst [smem:[#allocation19_spill]] %s1785_s15  ;;  %s1809_s26 = sld [smem:[#allocation3 + $0xe]] }
  0x39   :  { %2595 = sst [smem:[#allocation20_spill]] %s1787_s16  ;;  %s1811_s27 = sld [smem:[#allocation3 + $0xf]] }
  0x3a   :  { %2596 = sst [smem:[#allocation21_spill]] %s1789_s17  ;;  %s1813_s28 = sld [smem:[#allocation3 + $0x10]] }
  0x3b   :  { %2597 = sst [smem:[#allocation22_spill]] %s1795_s20  ;;  %s1815_s29 = sld [smem:[#allocation3 + $0x11]] }
  0x3c   :  { %2598 = sst [smem:[#allocation23_spill]] %s1805_s1  ;;  %s1817_s30 = sld [smem:[#allocation3 + $0x12]] }
  0x3d   :  { %s1819_s4 = sld [smem:[#allocation3 + $0x13]]  ;;  %s1821_s5 = sld [smem:[#allocation3 + $0x14]] }
  0x3e   :  { %2599 = sst [smem:[#allocation24_spill]] %s1809_s26  ;;  %s1823_s0 = sld [smem:[#allocation3 + $0x15]] }
  0x3f   :  { %s1825_s6 = sld [smem:[#allocation3 + $0x16]]  ;;  %s1827_s7 = sld [smem:[#allocation3 + $0x17]] }
  0x40   :  { %s1829_s10 = sld [smem:[#allocation3 + $0x18]]  ;;  %s1831_s11 = sld [smem:[#allocation3 + $0x19]] }
  0x41   :  { %s1833_s8 = sld [smem:[#allocation3 + $0x1a]]  ;;  %s1835_s9 = sld [smem:[#allocation3 + $0x1b]] }
  0x42   :  { %s1837_s3 = sld [smem:[#allocation3 + $0x1c]]  ;;  %s1839_s13 = sld [smem:[#allocation3 + $0x1d]] }
  0x43   :  { %2600 = sst [smem:[#allocation25_spill]] %s1819_s4  ;;  %s1841_s12 = sld [smem:[#allocation3 + $0x1e]] }
  0x44   :  { %2601 = sst [smem:[#allocation26_spill]] %s1821_s5  ;;  %s1843_s26 = sld [smem:[#allocation3 + $0x1f]] }
  0x45   :  { %2602 = sst [smem:[#allocation27_spill]] %s1823_s0  ;;  %s1845_s0 = sld [smem:[#allocation3 + $0x20]] }
  0x46   :  { %2603 = sst [smem:[#allocation28_spill]] %s1825_s6  ;;  %s1847_s20 = sld [smem:[#allocation3 + $0x21]] }
  0x47   :  { %2604 = sst [smem:[#allocation29_spill]] %s1827_s7  ;;  %s1849_s14 = sld [smem:[#allocation3 + $0x22]] }
  0x48   :  { %2605 = sst [smem:[#allocation30_spill]] %s1829_s10  ;;  %s1851_s10 = sld [smem:[#allocation3 + $0x23]] }
  0x49   :  { %2606 = sst [smem:[#allocation31_spill]] %s1831_s11  ;;  %s1853_s11 = sld [smem:[#allocation3 + $0x24]] }
  0x4a   :  { %2607 = sst [smem:[#allocation32_spill]] %s1833_s8  ;;  %s1855_s8 = sld [smem:[#allocation3 + $0x25]] }
  0x4b   :  { %2608 = sst [smem:[#allocation33_spill]] %s1835_s9  ;;  %s1857_s9 = sld [smem:[#allocation3 + $0x26]] }
  0x4c   :  { %2609 = sst [smem:[#allocation34_spill]] %s1837_s3  ;;  %s1859_s3 = sld [smem:[#allocation3 + $0x27]] }
  0x4d   :  { %2610 = sst [smem:[#allocation35_spill]] %s1839_s13  ;;  %s1861_s13 = sld [smem:[#allocation3 + $0x28]] }
  0x4e   :  { %2611 = sst [smem:[#allocation36_spill]] %s1841_s12  ;;  %s1863_s12 = sld [smem:[#allocation3 + $0x29]] }
  0x4f   :  { %2612 = sst [smem:[#allocation37_spill]] %s1843_s26  ;;  %s1865_s26 = sld [smem:[#allocation3 + $0x2a]] }
  0x50   :  { %2613 = sst [smem:[#allocation38_spill]] %s1845_s0  ;;  %s1867_s0 = sld [smem:[#allocation3 + $0x2b]] }
  0x51   :  { %2614 = sst [smem:[#allocation39_spill]] %s1847_s20  ;;  %s1869_s20 = sld [smem:[#allocation3 + $0x2c]] }
  0x52   :  { %2615 = sst [smem:[#allocation40_spill]] %s1849_s14  ;;  %s1871_s14 = sld [smem:[#allocation3 + $0x2d]] }
  0x53   :  { %2616 = sst [smem:[#allocation41_spill]] %s1851_s10  ;;  %s1873_s10 = sld [smem:[#allocation3 + $0x2e]] }
  0x54   :  { %2617 = sst [smem:[#allocation42_spill]] %s1853_s11  ;;  %s1875_s11 = sld [smem:[#allocation3 + $0x2f]] }
  0x55   :  { %2618 = sst [smem:[#allocation43_spill]] %s1855_s8  ;;  %s1877_s8 = sld [smem:[#allocation3 + $0x30]] }
  0x56   :  { %2619 = sst [smem:[#allocation44_spill]] %s1857_s9  ;;  %s1879_s9 = sld [smem:[#allocation3 + $0x31]] }
  0x57   :  { %2620 = sst [smem:[#allocation45_spill]] %s1859_s3  ;;  %s1881_s3 = sld [smem:[#allocation3 + $0x32]] }
  0x58   :  { %2621 = sst [smem:[#allocation46_spill]] %s1861_s13  ;;  %s1883_s13 = sld [smem:[#allocation3 + $0x33]] }
  0x59   :  { %2622 = sst [smem:[#allocation47_spill]] %s1863_s12  ;;  %s1885_s12 = sld [smem:[#allocation3 + $0x34]] }
  0x5a   :  { %2623 = sst [smem:[#allocation48_spill]] %s1865_s26  ;;  %s1887_s26 = sld [smem:[#allocation3 + $0x35]] }
  0x5b   :  { %2624 = sst [smem:[#allocation49_spill]] %s1867_s0  ;;  %s1889_s0 = sld [smem:[#allocation3 + $0x36]] }
  0x5c   :  { %2625 = sst [smem:[#allocation50_spill]] %s1869_s20  ;;  %s1891_s20 = sld [smem:[#allocation3 + $0x37]] }
  0x5d   :  { %2626 = sst [smem:[#allocation51_spill]] %s1871_s14  ;;  %s1893_s14 = sld [smem:[#allocation3 + $0x38]] }
  0x5e   :  { %2627 = sst [smem:[#allocation52_spill]] %s1873_s10  ;;  %s1895_s10 = sld [smem:[#allocation3 + $0x39]] }
  0x5f   :  { %2628 = sst [smem:[#allocation53_spill]] %s1875_s11  ;;  %s1897_s11 = sld [smem:[#allocation3 + $0x3a]] }
  0x60   :  { %2629 = sst [smem:[#allocation54_spill]] %s1877_s8  ;;  %s1899_s8 = sld [smem:[#allocation3 + $0x3b]] }
  0x61   :  { %2630 = sst [smem:[#allocation55_spill]] %s1879_s9  ;;  %s1901_s9 = sld [smem:[#allocation3 + $0x3c]] }
  0x62   :  { %2631 = sst [smem:[#allocation56_spill]] %s1881_s3  ;;  %s1903_s3 = sld [smem:[#allocation3 + $0x3d]] }
  0x63   :  { %2632 = sst [smem:[#allocation57_spill]] %s1883_s13  ;;  %s1905_s13 = sld [smem:[#allocation3 + $0x3e]] }
  0x64   :  { %2633 = sst [smem:[#allocation58_spill]] %s1885_s12  ;;  %s1907_s12 = sld [smem:[#allocation3 + $0x3f]] }
  0x65   :  { %2634 = sst [smem:[#allocation59_spill]] %s1887_s26  ;;  %s1909_s26 = sld [smem:[#allocation3 + $0x40]] }
  0x66   :  { %2635 = sst [smem:[#allocation60_spill]] %s1889_s0  ;;  %s1911_s0 = sld [smem:[#allocation3 + $0x41]] }
  0x67   :  { %2636 = sst [smem:[#allocation61_spill]] %s1891_s20  ;;  %s1913_s20 = sld [smem:[#allocation3 + $0x42]] }
  0x68   :  { %2637 = sst [smem:[#allocation62_spill]] %s1893_s14  ;;  %s1915_s14 = sld [smem:[#allocation3 + $0x43]] }
  0x69   :  { %2638 = sst [smem:[#allocation63_spill]] %s1895_s10  ;;  %s1917_s10 = sld [smem:[#allocation3 + $0x44]] }
  0x6a   :  { %2639 = sst [smem:[#allocation64_spill]] %s1897_s11  ;;  %s1919_s11 = sld [smem:[#allocation3 + $0x45]] }
  0x6b   :  { %2640 = sst [smem:[#allocation65_spill]] %s1899_s8  ;;  %s1921_s8 = sld [smem:[#allocation3 + $0x46]] }
  0x6c   :  { %2641 = sst [smem:[#allocation66_spill]] %s1901_s9  ;;  %s1923_s9 = sld [smem:[#allocation3 + $0x47]] }
  0x6d   :  { %2642 = sst [smem:[#allocation67_spill]] %s1903_s3  ;;  %s1925_s3 = sld [smem:[#allocation3 + $0x48]] }
  0x6e   :  { %2643 = sst [smem:[#allocation68_spill]] %s1905_s13  ;;  %s1927_s13 = sld [smem:[#allocation3 + $0x49]] }
  0x6f   :  { %2644 = sst [smem:[#allocation69_spill]] %s1907_s12  ;;  %s1929_s12 = sld [smem:[#allocation3 + $0x4a]] }
  0x70   :  { %2645 = sst [smem:[#allocation70_spill]] %s1909_s26  ;;  %s1931_s26 = sld [smem:[#allocation3 + $0x4b]] }
  0x71   :  { %2646 = sst [smem:[#allocation71_spill]] %s1911_s0  ;;  %s1933_s0 = sld [smem:[#allocation3 + $0x4c]] }
  0x72   :  { %2647 = sst [smem:[#allocation72_spill]] %s1913_s20  ;;  %s1935_s20 = sld [smem:[#allocation3 + $0x4d]] }
  0x73   :  { %2648 = sst [smem:[#allocation73_spill]] %s1915_s14  ;;  %s1937_s14 = sld [smem:[#allocation3 + $0x4e]] }
  0x74   :  { %2649 = sst [smem:[#allocation74_spill]] %s1917_s10  ;;  %s1939_s10 = sld [smem:[#allocation3 + $0x4f]] }
  0x75   :  { %2650 = sst [smem:[#allocation75_spill]] %s1919_s11  ;;  %s1941_s11 = sld [smem:[#allocation3 + $0x50]] }
  0x76   :  { %2651 = sst [smem:[#allocation76_spill]] %s1921_s8  ;;  %s1943_s8 = sld [smem:[#allocation3 + $0x51]] }
  0x77   :  { %2652 = sst [smem:[#allocation77_spill]] %s1923_s9  ;;  %s1945_s9 = sld [smem:[#allocation3 + $0x52]] }
  0x78   :  { %2653 = sst [smem:[#allocation78_spill]] %s1925_s3  ;;  %s1947_s3 = sld [smem:[#allocation3 + $0x53]] }
  0x79   :  { %2654 = sst [smem:[#allocation79_spill]] %s1927_s13  ;;  %s1949_s13 = sld [smem:[#allocation3 + $0x54]] }
  0x7a   :  { %2655 = sst [smem:[#allocation80_spill]] %s1929_s12  ;;  %s1951_s12 = sld [smem:[#allocation3 + $0x55]] }
  0x7b   :  { %2656 = sst [smem:[#allocation81_spill]] %s1931_s26  ;;  %s1953_s26 = sld [smem:[#allocation3 + $0x56]] }
  0x7c   :  { %2657 = sst [smem:[#allocation82_spill]] %s1933_s0  ;;  %s1955_s0 = sld [smem:[#allocation3 + $0x57]] }
  0x7d   :  { %2658 = sst [smem:[#allocation83_spill]] %s1935_s20  ;;  %s1957_s20 = sld [smem:[#allocation3 + $0x58]] }
  0x7e   :  { %2659 = sst [smem:[#allocation84_spill]] %s1937_s14  ;;  %s1959_s14 = sld [smem:[#allocation3 + $0x59]] }
  0x7f   :  { %2660 = sst [smem:[#allocation85_spill]] %s1939_s10  ;;  %s1961_s10 = sld [smem:[#allocation3 + $0x5a]] }
  0x80   :  { %2661 = sst [smem:[#allocation86_spill]] %s1941_s11  ;;  %s1963_s11 = sld [smem:[#allocation3 + $0x5b]] }
  0x81   :  { %2662 = sst [smem:[#allocation87_spill]] %s1943_s8  ;;  %s1965_s8 = sld [smem:[#allocation3 + $0x5c]] }
  0x82   :  { %2663 = sst [smem:[#allocation88_spill]] %s1945_s9  ;;  %s1967_s9 = sld [smem:[#allocation3 + $0x5d]] }
  0x83   :  { %2664 = sst [smem:[#allocation89_spill]] %s1947_s3  ;;  %s1969_s3 = sld [smem:[#allocation3 + $0x5e]] }
  0x84   :  { %2665 = sst [smem:[#allocation90_spill]] %s1949_s13  ;;  %s1971_s13 = sld [smem:[#allocation3 + $0x5f]] }
  0x85   :  { %2666 = sst [smem:[#allocation91_spill]] %s1951_s12  ;;  %s1973_s12 = sld [smem:[#allocation3 + $0x60]] }
  0x86   :  { %2667 = sst [smem:[#allocation92_spill]] %s1953_s26  ;;  %s1975_s26 = sld [smem:[#allocation3 + $0x61]] }
  0x87   :  { %2668 = sst [smem:[#allocation93_spill]] %s1955_s0  ;;  %s1977_s0 = smov 0  }
  0x88   :  { %2669 = sst [smem:[#allocation94_spill]] %s1963_s11 }
  0x89   :  { %2670 = sst [smem:[#allocation95_spill]] %s1967_s9 }
  0x8a LB: > { %2671 = sst [smem:[#allocation96_spill]] %s1711_s0  ;;  %s2574_s11 = sshll.u32 %s1711_s0, 6  ;;  %vm189_vm5 = vcmask 130048   ;;  %vm229_vm6 = vcmask 154648   ;;  %v302_v56 = vstv %s1791_s18  ;;  %v315_v59 = vstv %s1793_s19  ;;  %s1711_s0 = sphi %s1977_s0, %s178_s0  }
  0x8b   : > { %s1985_s9 = scalar_lea.vmem [#allocation9], %s2574_s11  ;;  %s1719_s11 = smov 3   ;;  %v335_v63 = vstv %s1797_s21 }
  0x8c   : > { %v181_v1 = vld [vmem:[%s1985_s9] sm:$0xff]  ;;  %v183_v2 = vld [vmem:[%s1985_s9 + $0x10] sm:$0xff]  ;;  %v182_v9 = vld [vmem:[%s1985_s9 + $0x8] sm:$0xff]  ;;  %s2672_s2 = sld [smem:[#allocation18_spill]]  ;;  %s2673_s15 = sld [smem:[#allocation19_spill]] }
  0x8d   : > { %v185_v3 = vld [vmem:[%s1985_s9 + $0x20] sm:$0xff]  ;;  %v187_v4 = vld [vmem:[%s1985_s9 + $0x30] sm:$0xff]  ;;  %v190_v5 = vsel %vm189_vm5, %v181_v1, -inf  ;;  %v191_v6 = vsel %vm189_vm5, %v183_v2, -inf  ;;  %v204_v8 = vsel %vm189_vm5, %v181_v1, 0.0  ;;  %v205_v12 = vsel %vm189_vm5, %v183_v2, 0.0 }
  0x8e   : > { %v192_v7 = vsel %vm189_vm5, %v185_v3, -inf  ;;  %v194_v11 = vsel %vm189_vm5, %v187_v4, -inf  ;;  %v184_v13 = vld [vmem:[%s1985_s9 + $0x18] sm:$0xff]  ;;  %v186_v14 = vld [vmem:[%s1985_s9 + $0x28] sm:$0xff]  ;;  %v197_v16 = vsel %vm189_vm5, %v182_v9, -inf  ;;  %v211_v23 = vsel %vm189_vm5, %v182_v9, 0.0 }
  0x8f   : > { %v193_v10 = vmax.f32 %v190_v5, %v192_v7  ;;  %v188_v15 = vld [vmem:[%s1985_s9 + $0x38] sm:$0xff]  ;;  %v195_v17 = vmax.f32 %v191_v6, %v194_v11  ;;  %v198_v18 = vsel %vm189_vm5, %v184_v13, -inf  ;;  %v199_v19 = vsel %vm189_vm5, %v186_v14, -inf  ;;  %s2674_s16 = sld [smem:[#allocation20_spill]]  ;;  %s2675_s17 = sld [smem:[#allocation21_spill]] }
  0x90   : > { %v201_v20 = vsel %vm189_vm5, %v188_v15, -inf  ;;  %v200_v21 = vmax.f32 %v197_v16, %v199_v19  ;;  %v212_v24 = vsel %vm189_vm5, %v184_v13, 0.0  ;;  %v206_v26 = vadd.f32 %v205_v12, %v204_v8  ;;  %s2577_s0 = smov 127   ;;  %s2676_s1 = sld [smem:[#allocation23_spill]] }
  0x91   : > { %v202_v22 = vmax.f32 %v198_v18, %v201_v20  ;;  %v196_v25 = vmax.f32 %v193_v10, %v195_v17  ;;  %v207_v27 = vsel %vm189_vm5, %v185_v3, 0.0  ;;  %v209_v28 = vsel %vm189_vm5, %v187_v4, 0.0  ;;  %s2682_s4 = sld [smem:[#allocation25_spill]]  ;;  %s2683_s5 = sld [smem:[#allocation26_spill]] }
  0x92   : > { %v208_v30 = vadd.f32 %v207_v27, %v206_v26  ;;  %v213_v31 = vadd.f32 %v212_v24, %v211_v23  ;;  %v214_v32 = vsel %vm189_vm5, %v186_v14, 0.0  ;;  %v216_v33 = vsel %vm189_vm5, %v188_v15, 0.0  ;;  %s2685_s6 = sld [smem:[#allocation28_spill]]  ;;  %s2686_s7 = sld [smem:[#allocation29_spill]] }
  0x93   : > { %223 = vrot.lane.b32.xlu0 %v196_v25, %s1719_s11  ;;  %v203_v29 = vmax.f32 %v200_v21, %v202_v22  ;;  %v250_v41 = vstv %s2672_s2  ;;  %v263_v45 = vstv %s2673_s15  ;;  %s2579_s2 = smov 125   ;;  %s2581_s15 = smov 124   ;;  %v348_v3 = vstv %s1799_s22 }
  0x94   : > { %v210_v34 = vadd.f32 %v209_v28, %v208_v30  ;;  %v215_v35 = vadd.f32 %v214_v32, %v213_v31  ;;  %v361_v6 = vstv %s1801_s23  ;;  %v374_v9 = vstv %s1803_s24 }
  0x95   : > { %v276_v50 = vstv %s2674_s16  ;;  %v289_v53 = vstv %s2675_s17  ;;  %v400_v15 = vstv %s1807_s25  ;;  %s2680_s16 = smov 123   ;;  %v420_v19 = vstv %s1811_s27  ;;  %s2687_s17 = sld [smem:[#allocation30_spill]] }
  0x96   : > { %v219_v36 = vmul.f32 0.25, %v210_v34  ;;  %v217_v37 = vadd.f32 %v216_v33, %v215_v35  ;;  %v387_v12 = vstv %s2676_s1  ;;  %v433_v23 = vstv %s1813_s28  ;;  %s2684_s1 = smov 126  }
  0x97   : > { %225 = vrot.lane.b32.xlu0 %v203_v29, %s1719_s11  ;;  %v446_v26 = vstv %s1815_s29  ;;  %v459_v29 = vstv %s1817_s30  ;;  %v472_v32 = vstv %s2682_s4  ;;  %s2688_s4 = sld [smem:[#allocation31_spill]] }
  0x98   : > { %234 = vrot.lane.b32.xlu1 %v219_v36, %s1719_s11  ;;  %v220_v38 = vmul.f32 0.25, %v217_v37  ;;  %v485_v35 = vstv %s2683_s5  ;;  %s2689_s5 = sld [smem:[#allocation32_spill]] }
  0x9c   : > { %236 = vrot.lane.b32.xlu1 %v220_v38, %s1719_s11  ;;  %s2587_s11 = smov 126  }
 0x105   : > { %v224_v39 = vpop.permute.xlu0 %223 }
 0x106   : > { %230 = vst.msk [vmem:[#allocation2 + $0x3] sm:$0xff] %vm229_vm6, %v224_v39  ;;  %v505_v39 = vstv %s2685_s6  ;;  %s2690_s6 = sld [smem:[#allocation33_spill]] }
 0x109   : > { %v226_v40 = vpop.permute.xlu0 %225 }
 0x10a   : > { %231 = vst.msk [vmem:[#allocation2 + $0xb] sm:$0xff] %vm229_vm6, %v226_v40  ;;  %v235_v42 = vpop.permute.xlu1 %234 }
 0x10b   : > { %241 = vst.msk [vmem:[#allocation2 + $0x1b] sm:$0xff] %vm229_vm6, %v235_v42 }
 0x10d   : > { %v2012_v43 = vld [vmem:[#allocation2] sm:$0xff] }
 0x10e   : > { %v251_v44 = vmul.f32 %v250_v41, %v2012_v43  ;;  %v237_v46 = vpop.permute.xlu1 %236  ;;  %v264_v48 = vmul.f32 %v263_v45, %v2012_v43  ;;  %v277_v51 = vmul.f32 %v276_v50, %v2012_v43  ;;  %v290_v54 = vmul.f32 %v289_v53, %v2012_v43  ;;  %v2041_v62 = vld [vmem:[#allocation2 + $0x1] sm:$0xff] }
 0x10f   : > { %242 = vst.msk [vmem:[#allocation2 + $0x23] sm:$0xff] %vm229_vm6, %v237_v46  ;;  %v303_v57 = vmul.f32 %v302_v56, %v2012_v43  ;;  %v316_v60 = vmul.f32 %v315_v59, %v2012_v43  ;;  %v336_v0 = vmul.f32 %v335_v63, %v2041_v62  ;;  %v349_v4 = vmul.f32 %v348_v3, %v2041_v62  ;;  %v2075_v18 = vld [vmem:[#allocation2 + $0x2] sm:$0xff] }
 0x110   : > { %255 = vrot.lane.b32.xlu0 %v251_v44, %s2577_s0  ;;  %v362_v7 = vmul.f32 %v361_v6, %v2041_v62  ;;  %v375_v10 = vmul.f32 %v374_v9, %v2041_v62  ;;  %v388_v13 = vmul.f32 %v387_v12, %v2041_v62  ;;  %v401_v16 = vmul.f32 %v400_v15, %v2041_v62  ;;  %v2109_v38 = vld [vmem:[#allocation2 + $0x3] sm:$0xff] }
 0x111   : > { %v2017_v47 = vld [vmem:[#allocation2 + $0x8] sm:$0xff]  ;;  %v421_v20 = vmul.f32 %v420_v19, %v2075_v18  ;;  %v434_v24 = vmul.f32 %v433_v23, %v2075_v18  ;;  %v447_v27 = vmul.f32 %v446_v26, %v2075_v18  ;;  %v460_v30 = vmul.f32 %v459_v29, %v2075_v18 }
 0x112   : > { %v252_v49 = vmul.f32 %v250_v41, %v2017_v47  ;;  %v265_v52 = vmul.f32 %v263_v45, %v2017_v47  ;;  %v278_v55 = vmul.f32 %v276_v50, %v2017_v47  ;;  %v291_v58 = vmul.f32 %v289_v53, %v2017_v47  ;;  %v2048_v2 = vld [vmem:[#allocation2 + $0x9] sm:$0xff] }
 0x113   : > { %v304_v61 = vmul.f32 %v302_v56, %v2017_v47  ;;  %v317_v1 = vmul.f32 %v315_v59, %v2017_v47  ;;  %v337_v5 = vmul.f32 %v335_v63, %v2048_v2  ;;  %v350_v8 = vmul.f32 %v348_v3, %v2048_v2  ;;  %v2082_v22 = vld [vmem:[#allocation2 + $0xa] sm:$0xff] }
 0x114   : > { %268 = vrot.lane.b32.xlu0 %v264_v48, %s2587_s11  ;;  %257 = vrot.lane.b32.xlu1 %v252_v49, %s2577_s0  ;;  %s2583_s0 = smov 123   ;;  %v363_v11 = vmul.f32 %v361_v6, %v2048_v2  ;;  %v376_v14 = vmul.f32 %v374_v9, %v2048_v2  ;;  %v389_v17 = vmul.f32 %v387_v12, %v2048_v2  ;;  %v2116_v42 = vld [vmem:[#allocation2 + $0xb] sm:$0xff]  ;;  %v518_v44 = vstv %s2686_s7  ;;  %s2691_s7 = sld [smem:[#allocation35_spill]] }
 0x115   : > { %v402_v21 = vmul.f32 %v400_v15, %v2048_v2  ;;  %v422_v25 = vmul.f32 %v420_v19, %v2082_v22  ;;  %v435_v28 = vmul.f32 %v433_v23, %v2082_v22  ;;  %v448_v31 = vmul.f32 %v446_v26, %v2082_v22 }
 0x116   : > { %v473_v33 = vmul.f32 %v472_v32, %v2075_v18  ;;  %v461_v34 = vmul.f32 %v459_v29, %v2082_v22  ;;  %v486_v36 = vmul.f32 %v485_v35, %v2075_v18  ;;  %v474_v37 = vmul.f32 %v472_v32, %v2082_v22 }
 0x117   : > { %v506_v40 = vmul.f32 %v505_v39, %v2109_v38  ;;  %v487_v41 = vmul.f32 %v485_v35, %v2082_v22  ;;  %v519_v45 = vmul.f32 %v518_v44, %v2109_v38  ;;  %v507_v46 = vmul.f32 %v505_v39, %v2116_v42 }
 0x118   : > { %281 = vrot.lane.b32.xlu0 %v277_v51, %s2579_s2  ;;  %270 = vrot.lane.b32.xlu1 %v265_v52, %s2587_s11  ;;  %v531_v48 = vstv %s2687_s17  ;;  %v520_v50 = vmul.f32 %v518_v44, %v2116_v42  ;;  %v544_v51 = vstv %s2688_s4  ;;  %s2692_s17 = sld [smem:[#allocation36_spill]]  ;;  %s2693_s4 = sld [smem:[#allocation37_spill]] }
 0x119   : > { %v532_v49 = vmul.f32 %v531_v48, %v2109_v38  ;;  %v545_v52 = vmul.f32 %v544_v51, %v2109_v38  ;;  %v533_v53 = vmul.f32 %v531_v48, %v2116_v42  ;;  %v546_v56 = vmul.f32 %v544_v51, %v2116_v42 }
 0x11c   : > { %294 = vrot.lane.b32.xlu0 %v290_v54, %s2581_s15  ;;  %283 = vrot.lane.b32.xlu1 %v278_v55, %s2579_s2  ;;  %s2585_s2 = smov 122   ;;  %v557_v54 = vstv %s2689_s5  ;;  %s2694_s5 = sld [smem:[#allocation38_spill]] }
 0x11d   : > { %v558_v55 = vmul.f32 %v557_v54, %v2109_v38  ;;  %v559_v59 = vmul.f32 %v557_v54, %v2116_v42 }
 0x11e   : > { %v603_v3 = vstv %s2692_s17  ;;  %v616_v6 = vstv %s2693_s4  ;;  %s2697_s17 = sld [smem:[#allocation42_spill]]  ;;  %s2698_s4 = sld [smem:[#allocation43_spill]] }
 0x120   : > { %307 = vrot.lane.b32.xlu0 %v303_v57, %s2583_s0  ;;  %296 = vrot.lane.b32.xlu1 %v291_v58, %s2581_s15  ;;  %s2677_s15 = smov 127   ;;  %v570_v57 = vstv %s2690_s6  ;;  %s2695_s6 = sld [smem:[#allocation39_spill]] }
 0x121   : > { %v571_v58 = vmul.f32 %v570_v57, %v2109_v38 }
 0x122   : > { %v629_v9 = vstv %s2694_s5  ;;  %s2699_s5 = sld [smem:[#allocation17_spill]] }
 0x124   : > { %320 = vrot.lane.b32.xlu0 %v316_v60, %s2585_s2  ;;  %309 = vrot.lane.b32.xlu1 %v304_v61, %s2583_s0  ;;  %s2678_s0 = smov 125   ;;  %v2143_v60 = vld [vmem:[#allocation2 + $0x4] sm:$0xff]  ;;  %v590_v61 = vstv %s2691_s7  ;;  %s2696_s7 = sld [smem:[#allocation40_spill]] }
 0x125   : > { %v591_v63 = vmul.f32 %v590_v61, %v2143_v60 }
 0x126   : > { %v642_v12 = vstv %s2695_s6  ;;  %s2700_s6 = sld [smem:[#allocation44_spill]] }
 0x128   : > { %340 = vrot.lane.b32.xlu0 %v336_v0, %s2677_s15  ;;  %322 = vrot.lane.b32.xlu1 %v317_v1, %s2585_s2  ;;  %s2679_s2 = smov 124   ;;  %v572_v0 = vmul.f32 %v570_v57, %v2116_v42  ;;  %v2150_v1 = vld [vmem:[#allocation2 + $0xc] sm:$0xff]  ;;  %v245_v29 = vstv %s2699_s5  ;;  %s2704_s5 = sld [smem:[#allocation47_spill]] }
 0x129   : > { %v644_v19 = vmul.f32 %v642_v12, %v2150_v1  ;;  %v247_v44 = vmul.f32 %v245_v29, %v2017_v47 }
 0x12a   : > { %v655_v15 = vstv %s2696_s7  ;;  %s2701_s7 = sld [smem:[#allocation45_spill]] }
 0x12b   : > { %v657_v26 = vmul.f32 %v655_v15, %v2150_v1 }
 0x12c   : > { %353 = vrot.lane.b32.xlu0 %v349_v4, %s2587_s11  ;;  %342 = vrot.lane.b32.xlu1 %v337_v5, %s2677_s15  ;;  %v604_v4 = vmul.f32 %v603_v3, %v2143_v60  ;;  %v592_v5 = vmul.f32 %v590_v61, %v2150_v1  ;;  %v701_v35 = vstv %s2700_s6  ;;  %s2705_s6 = sld [smem:[#allocation49_spill]] }
 0x130   : > { %366 = vrot.lane.b32.xlu0 %v362_v7, %s2678_s0  ;;  %355 = vrot.lane.b32.xlu1 %v350_v8, %s2587_s11  ;;  %s2681_s11 = smov 122   ;;  %v617_v7 = vmul.f32 %v616_v6, %v2143_v60  ;;  %v605_v8 = vmul.f32 %v603_v3, %v2150_v1 }
 0x134   : > { %379 = vrot.lane.b32.xlu0 %v375_v10, %s2679_s2  ;;  %368 = vrot.lane.b32.xlu1 %v363_v11, %s2678_s0  ;;  %v630_v10 = vmul.f32 %v629_v9, %v2143_v60  ;;  %v618_v11 = vmul.f32 %v616_v6, %v2150_v1 }
 0x138   : > { %392 = vrot.lane.b32.xlu0 %v388_v13, %s2680_s16  ;;  %381 = vrot.lane.b32.xlu1 %v376_v14, %s2679_s2  ;;  %v643_v13 = vmul.f32 %v642_v12, %v2143_v60  ;;  %v631_v14 = vmul.f32 %v629_v9, %v2150_v1 }
 0x13c   : > { %405 = vrot.lane.b32.xlu0 %v401_v16, %s2681_s11  ;;  %394 = vrot.lane.b32.xlu1 %v389_v17, %s2680_s16  ;;  %v656_v17 = vmul.f32 %v655_v15, %v2143_v60 }
 0x140   : > { %425 = vrot.lane.b32.xlu0 %v421_v20, %s2677_s15  ;;  %407 = vrot.lane.b32.xlu1 %v402_v21, %s2681_s11  ;;  %v2177_v20 = vld [vmem:[#allocation2 + $0x5] sm:$0xff]  ;;  %v675_v21 = vstv %s2697_s17  ;;  %s2702_s17 = sld [smem:[#allocation46_spill]] }
 0x144   : > { %438 = vrot.lane.b32.xlu0 %v434_v24, %s2684_s1  ;;  %427 = vrot.lane.b32.xlu1 %v422_v25, %s2677_s15  ;;  %v676_v25 = vmul.f32 %v675_v21, %v2177_v20 }
 0x148   : > { %451 = vrot.lane.b32.xlu0 %v447_v27, %s2678_s0  ;;  %440 = vrot.lane.b32.xlu1 %v435_v28, %s2684_s1  ;;  %v2184_v27 = vld [vmem:[#allocation2 + $0xd] sm:$0xff]  ;;  %v688_v28 = vstv %s2698_s4  ;;  %s2703_s4 = sld [smem:[#allocation22_spill]] }
 0x149   : > { %v689_v32 = vmul.f32 %v688_v28, %v2177_v20 }
 0x14c   : > { %464 = vrot.lane.b32.xlu0 %v460_v30, %s2679_s2  ;;  %453 = vrot.lane.b32.xlu1 %v448_v31, %s2678_s0 }
 0x150   : > { %477 = vrot.lane.b32.xlu0 %v473_v33, %s2680_s16  ;;  %466 = vrot.lane.b32.xlu1 %v461_v34, %s2679_s2  ;;  %v677_v33 = vmul.f32 %v675_v21, %v2184_v27  ;;  %v246_v34 = vmul.f32 %v245_v29, %v2012_v43 }
 0x154   : > { %490 = vrot.lane.b32.xlu0 %v486_v36, %s2681_s11  ;;  %479 = vrot.lane.b32.xlu1 %v474_v37, %s2680_s16 }
 0x158   : > { %510 = vrot.lane.b32.xlu0 %v506_v40, %s2677_s15  ;;  %492 = vrot.lane.b32.xlu1 %v487_v41, %s2681_s11  ;;  %v702_v40 = vmul.f32 %v701_v35, %v2177_v20  ;;  %v690_v41 = vmul.f32 %v688_v28, %v2184_v27 }
 0x15c   : > { %523 = vrot.lane.b32.xlu0 %v519_v45, %s2684_s1  ;;  %512 = vrot.lane.b32.xlu1 %v507_v46, %s2677_s15  ;;  %v714_v46 = vstv %s2701_s7  ;;  %s2706_s7 = sld [smem:[#allocation50_spill]] }
 0x15d   : > { %v715_v51 = vmul.f32 %v714_v46, %v2177_v20 }
 0x160   : > { %536 = vrot.lane.b32.xlu0 %v532_v49, %s2678_s0  ;;  %525 = vrot.lane.b32.xlu1 %v520_v50, %s2684_s1 }
 0x164   : > { %549 = vrot.lane.b32.xlu0 %v545_v52, %s2679_s2  ;;  %538 = vrot.lane.b32.xlu1 %v533_v53, %s2678_s0  ;;  %v703_v52 = vmul.f32 %v701_v35, %v2184_v27 }
 0x168   : > { %562 = vrot.lane.b32.xlu0 %v558_v55, %s2680_s16  ;;  %551 = vrot.lane.b32.xlu1 %v546_v56, %s2679_s2  ;;  %v727_v55 = vstv %s2702_s17  ;;  %v330_v56 = vstv %s2703_s4  ;;  %s2707_s17 = sld [smem:[#allocation51_spill]]  ;;  %s2708_s4 = sld [smem:[#allocation52_spill]] }
 0x169   : > { %v728_v61 = vmul.f32 %v727_v55, %v2177_v20  ;;  %v332_v12 = vmul.f32 %v330_v56, %v2048_v2 }
 0x16c   : > { %575 = vrot.lane.b32.xlu0 %v571_v58, %s2681_s11  ;;  %564 = vrot.lane.b32.xlu1 %v559_v59, %s2680_s16 }
 0x16e   : > { %v786_v29 = vstv %s2707_s17  ;;  %s2712_s17 = sld [smem:[#allocation56_spill]] }
 0x170   : > { %595 = vrot.lane.b32.xlu0 %v591_v63, %s2677_s15  ;;  %577 = vrot.lane.b32.xlu1 %v572_v0, %s2681_s11  ;;  %v716_v63 = vmul.f32 %v714_v46, %v2184_v27  ;;  %v331_v0 = vmul.f32 %v330_v56, %v2041_v62 }
 0x174   : > { %608 = vrot.lane.b32.xlu0 %v604_v4, %s2684_s1  ;;  %597 = vrot.lane.b32.xlu1 %v592_v5, %s2677_s15  ;;  %v740_v5 = vstv %s2704_s5  ;;  %s2709_s5 = sld [smem:[#allocation53_spill]] }
 0x175   : > { %v742_v21 = vmul.f32 %v740_v5, %v2184_v27 }
 0x178   : > { %621 = vrot.lane.b32.xlu0 %v617_v7, %s2678_s0  ;;  %610 = vrot.lane.b32.xlu1 %v605_v8, %s2684_s1 }
 0x17c   : > { %634 = vrot.lane.b32.xlu0 %v630_v10, %s2679_s2  ;;  %623 = vrot.lane.b32.xlu1 %v618_v11, %s2678_s0  ;;  %v741_v10 = vmul.f32 %v740_v5, %v2177_v20  ;;  %v729_v11 = vmul.f32 %v727_v55, %v2184_v27 }
 0x180   : > { %647 = vrot.lane.b32.xlu0 %v643_v13, %s2680_s16  ;;  %636 = vrot.lane.b32.xlu1 %v631_v14, %s2679_s2  ;;  %v2217_v13 = vld [vmem:[#allocation2 + $0x6] sm:$0xff]  ;;  %v760_v14 = vstv %s2705_s6  ;;  %s2710_s6 = sld [smem:[#allocation24_spill]] }
 0x182   : > { %v256_v16 = vpop.permute.xlu0 %255 }
 0x183   : > { %v261_v36 = vadd.f32 %v256_v16, %v246_v34 }
 0x184   : > { %660 = vrot.lane.b32.xlu0 %v656_v17, %s2681_s11  ;;  %649 = vrot.lane.b32.xlu1 %v644_v19, %s2680_s16  ;;  %v761_v19 = vmul.f32 %v760_v14, %v2217_v13 }
 0x186   : > { %v258_v23 = vpop.permute.xlu1 %257  ;;  %v269_v24 = vpop.permute.xlu0 %268 }
 0x187   : > { %v274_v45 = vadd.f32 %v269_v24, %v261_v36  ;;  %v262_v43 = vadd.f32 %v258_v23, %v247_v44  ;;  %v2224_v23 = vld [vmem:[#allocation2 + $0xe] sm:$0xff]  ;;  %v773_v24 = vstv %s2706_s7  ;;  %v799_v36 = vstv %s2708_s4  ;;  %s2711_s7 = sld [smem:[#allocation54_spill]]  ;;  %s2713_s4 = sld [smem:[#allocation57_spill]] }
 0x188   : > { %680 = vrot.lane.b32.xlu0 %v676_v25, %s2677_s15  ;;  %662 = vrot.lane.b32.xlu1 %v657_v26, %s2681_s11  ;;  %v774_v26 = vmul.f32 %v773_v24, %v2217_v13  ;;  %v762_v28 = vmul.f32 %v760_v14, %v2224_v23  ;;  %v775_v34 = vmul.f32 %v773_v24, %v2224_v23  ;;  %v2262_v14 = vld [vmem:[#allocation2 + $0x20] sm:$0xff] }
 0x189   : > { %v800_v44 = vmul.f32 %v799_v36, %v2217_v13  ;;  %v801_v55 = vmul.f32 %v799_v36, %v2224_v23 }
 0x18a   : > { %v271_v30 = vpop.permute.xlu1 %270  ;;  %v282_v31 = vpop.permute.xlu0 %281 }
 0x18b   : > { %v287_v48 = vadd.f32 %v282_v31, %v274_v45  ;;  %v275_v53 = vadd.f32 %v271_v30, %v262_v43  ;;  %v788_v45 = vmul.f32 %v786_v29, %v2224_v23 }
 0x18c   : > { %693 = vrot.lane.b32.xlu0 %v689_v32, %s2684_s1  ;;  %682 = vrot.lane.b32.xlu1 %v677_v33, %s2677_s15  ;;  %v787_v33 = vmul.f32 %v786_v29, %v2217_v13 }
 0x18e   : > { %v284_v37 = vpop.permute.xlu1 %283  ;;  %v295_v39 = vpop.permute.xlu0 %294 }
 0x18f   : > { %v300_v54 = vadd.f32 %v295_v39, %v287_v48  ;;  %v288_v47 = vadd.f32 %v284_v37, %v275_v53  ;;  %v812_v48 = vstv %s2709_s5  ;;  %s2714_s5 = sld [smem:[#allocation58_spill]] }
 0x190   : > { %706 = vrot.lane.b32.xlu0 %v702_v40, %s2678_s0  ;;  %695 = vrot.lane.b32.xlu1 %v690_v41, %s2684_s1 }
 0x192   : > { %v297_v49 = vpop.permute.xlu1 %296  ;;  %v308_v50 = vpop.permute.xlu0 %307 }
 0x193   : > { %v313_v57 = vadd.f32 %v308_v50, %v300_v54  ;;  %v301_v3 = vadd.f32 %v297_v49, %v288_v47  ;;  %v415_v49 = vstv %s2710_s6  ;;  %v813_v54 = vmul.f32 %v812_v48, %v2217_v13  ;;  %s2715_s6 = sld [smem:[#allocation59_spill]] }
 0x194   : > { %719 = vrot.lane.b32.xlu0 %v715_v51, %s2679_s2  ;;  %708 = vrot.lane.b32.xlu1 %v703_v52, %s2678_s0  ;;  %v416_v56 = vmul.f32 %v415_v49, %v2075_v18  ;;  %v417_v5 = vmul.f32 %v415_v49, %v2082_v22  ;;  %v2254_v18 = vld [vmem:[#allocation2 + $0x18] sm:$0xff] }
 0x196   : > { %v310_v58 = vpop.permute.xlu1 %309  ;;  %v321_v59 = vpop.permute.xlu0 %320 }
 0x197   : > { %v326_v4 = vadd.f32 %v321_v59, %v313_v57  ;;  %v314_v6 = vadd.f32 %v310_v58, %v301_v3  ;;  %v825_v58 = vstv %s2711_s7  ;;  %s2716_s7 = sld [smem:[#allocation60_spill]] }
 0x198   : > { %732 = vrot.lane.b32.xlu0 %v728_v61, %s2680_s16  ;;  %721 = vrot.lane.b32.xlu1 %v716_v63, %s2679_s2  ;;  %v826_v3 = vmul.f32 %v825_v58, %v2217_v13 }
 0x199   : > { %v333_v7 = vadd.f32 %v331_v0, %v326_v4  ;;  %v814_v4 = vmul.f32 %v812_v48, %v2224_v23  ;;  %v884_v29 = vstv %s2715_s6  ;;  %s2720_s6 = sld [smem:[#allocation64_spill]] }
 0x19a   : > { %v323_v8 = vpop.permute.xlu1 %322  ;;  %v341_v9 = vpop.permute.xlu0 %340  ;;  %v886_v48 = vmul.f32 %v884_v29, %v2262_v14 }
 0x19b   : > { %v327_v62 = vadd.f32 %v323_v8, %v314_v6  ;;  %v346_v30 = vadd.f32 %v341_v9, %v333_v7  ;;  %v845_v7 = vstv %s2712_s17  ;;  %s2717_s17 = sld [smem:[#allocation27_spill]] }
 0x19c   : > { %745 = vrot.lane.b32.xlu0 %v741_v10, %s2681_s11  ;;  %734 = vrot.lane.b32.xlu1 %v729_v11, %s2680_s16  ;;  %v846_v11 = vmul.f32 %v845_v7, %v2254_v18 }
 0x19d   : > { %v334_v15 = vadd.f32 %v332_v12, %v327_v62  ;;  %v827_v12 = vmul.f32 %v825_v58, %v2224_v23  ;;  %v858_v62 = vstv %s2713_s4  ;;  %s2718_s4 = sld [smem:[#allocation61_spill]] }
 0x19e   : > { %v343_v16 = vpop.permute.xlu1 %342  ;;  %v354_v17 = vpop.permute.xlu0 %353 }
 0x19f   : > { %v359_v35 = vadd.f32 %v354_v17, %v346_v30  ;;  %v347_v37 = vadd.f32 %v343_v16, %v334_v15  ;;  %v859_v16 = vmul.f32 %v858_v62, %v2254_v18  ;;  %v847_v17 = vmul.f32 %v845_v7, %v2262_v14 }
 0x1a0   : > { %765 = vrot.lane.b32.xlu0 %v761_v19, %s2677_s15  ;;  %747 = vrot.lane.b32.xlu1 %v742_v21, %s2681_s11  ;;  %v871_v19 = vstv %s2714_s5  ;;  %s2719_s5 = sld [smem:[#allocation63_spill]]  ;;  %v943_v7 = vstv %s2720_s6  ;;  %s2725_s6 = sld [smem:[#allocation68_spill]] }
 0x1a2   : > { %v356_v2 = vpop.permute.xlu1 %355  ;;  %v367_v25 = vpop.permute.xlu0 %366 }
 0x1a3   : > { %v372_v39 = vadd.f32 %v367_v25, %v359_v35  ;;  %v360_v46 = vadd.f32 %v356_v2, %v347_v37  ;;  %v872_v25 = vmul.f32 %v871_v19, %v2254_v18  ;;  %v873_v35 = vmul.f32 %v871_v19, %v2262_v14 }
 0x1a4   : > { %778 = vrot.lane.b32.xlu0 %v774_v26, %s2684_s1  ;;  %767 = vrot.lane.b32.xlu1 %v762_v28, %s2677_s15  ;;  %v860_v26 = vmul.f32 %v858_v62, %v2262_v14 }
 0x1a6   : > { %v369_v31 = vpop.permute.xlu1 %368  ;;  %v380_v32 = vpop.permute.xlu0 %379 }
 0x1a7   : > { %v385_v43 = vadd.f32 %v380_v32, %v372_v39  ;;  %v373_v50 = vadd.f32 %v369_v31, %v360_v46  ;;  %v897_v39 = vstv %s2716_s7  ;;  %s2721_s7 = sld [smem:[#allocation65_spill]] }
 0x1a8   : > { %791 = vrot.lane.b32.xlu0 %v787_v33, %s2678_s0  ;;  %780 = vrot.lane.b32.xlu1 %v775_v34, %s2684_s1  ;;  %v885_v34 = vmul.f32 %v884_v29, %v2254_v18 }
 0x1aa   : > { %v382_v40 = vpop.permute.xlu1 %381  ;;  %v393_v41 = vpop.permute.xlu0 %392 }
 0x1ab   : > { %v398_v51 = vadd.f32 %v393_v41, %v385_v43  ;;  %v386_v47 = vadd.f32 %v382_v40, %v373_v50  ;;  %v500_v40 = vstv %s2717_s17  ;;  %v898_v43 = vmul.f32 %v897_v39, %v2254_v18  ;;  %s2722_s17 = sld [smem:[#allocation66_spill]] }
 0x1ac   : > { %804 = vrot.lane.b32.xlu0 %v800_v44, %s2679_s2  ;;  %793 = vrot.lane.b32.xlu1 %v788_v45, %s2678_s0  ;;  %v501_v49 = vmul.f32 %v500_v40, %v2109_v38  ;;  %v502_v58 = vmul.f32 %v500_v40, %v2116_v42  ;;  %v2291_v38 = vld [vmem:[#allocation2 + $0x19] sm:$0xff] }
 0x1ae   : > { %v395_v52 = vpop.permute.xlu1 %394  ;;  %v406_v53 = vpop.permute.xlu0 %405 }
 0x1af   : > { %v411_v57 = vadd.f32 %v406_v53, %v398_v51  ;;  %v399_v59 = vadd.f32 %v395_v52, %v386_v47  ;;  %v910_v52 = vstv %s2718_s4  ;;  %s2723_s4 = sld [smem:[#allocation67_spill]] }
 0x1b0   : > { %817 = vrot.lane.b32.xlu0 %v813_v54, %s2680_s16  ;;  %806 = vrot.lane.b32.xlu1 %v801_v55, %s2679_s2  ;;  %v911_v47 = vmul.f32 %v910_v52, %v2254_v18 }
 0x1b1   : > { %v418_v61 = vadd.f32 %v416_v56, %v411_v57  ;;  %v899_v57 = vmul.f32 %v897_v39, %v2262_v14  ;;  %v969_v19 = vstv %s2722_s17  ;;  %s2727_s17 = sld [smem:[#allocation71_spill]] }
 0x1b2   : > { %v408_v63 = vpop.permute.xlu1 %407  ;;  %v426_v0 = vpop.permute.xlu0 %425 }
 0x1b3   : > { %v412_v6 = vadd.f32 %v408_v63, %v399_v59  ;;  %v431_v21 = vadd.f32 %v426_v0, %v418_v61  ;;  %v930_v61 = vstv %s2719_s5  ;;  %s2724_s5 = sld [smem:[#allocation34_spill]] }
 0x1b4   : > { %830 = vrot.lane.b32.xlu0 %v826_v3, %s2681_s11  ;;  %819 = vrot.lane.b32.xlu1 %v814_v4, %s2680_s16  ;;  %v931_v4 = vmul.f32 %v930_v61, %v2291_v38 }
 0x1b5   : > { %v419_v8 = vadd.f32 %v417_v5, %v412_v6  ;;  %v912_v5 = vmul.f32 %v910_v52, %v2262_v14  ;;  %v2298_v6 = vld [vmem:[#allocation2 + $0x21] sm:$0xff] }
 0x1b6   : > { %v428_v9 = vpop.permute.xlu1 %427  ;;  %v439_v10 = vpop.permute.xlu0 %438 }
 0x1b7   : > { %v444_v28 = vadd.f32 %v439_v10, %v431_v21  ;;  %v432_v30 = vadd.f32 %v428_v9, %v419_v8  ;;  %v932_v9 = vmul.f32 %v930_v61, %v2298_v6  ;;  %v944_v10 = vmul.f32 %v943_v7, %v2291_v38 }
 0x1b8   : > { %850 = vrot.lane.b32.xlu0 %v846_v11, %s2677_s15  ;;  %832 = vrot.lane.b32.xlu1 %v827_v12, %s2681_s11  ;;  %v956_v11 = vstv %s2721_s7  ;;  %s2726_s7 = sld [smem:[#allocation70_spill]]  ;;  %v1028_v61 = vstv %s2727_s17  ;;  %s2732_s17 = sld [smem:[#allocation75_spill]] }
 0x1ba   : > { %v441_v22 = vpop.permute.xlu1 %440  ;;  %v452_v15 = vpop.permute.xlu0 %451 }
 0x1bb   : > { %v457_v31 = vadd.f32 %v452_v15, %v444_v28  ;;  %v445_v36 = vadd.f32 %v441_v22, %v432_v30  ;;  %v945_v15 = vmul.f32 %v943_v7, %v2298_v6  ;;  %v970_v28 = vmul.f32 %v969_v19, %v2291_v38 }
 0x1bc   : > { %863 = vrot.lane.b32.xlu0 %v859_v16, %s2684_s1  ;;  %852 = vrot.lane.b32.xlu1 %v847_v17, %s2677_s15  ;;  %v957_v16 = vmul.f32 %v956_v11, %v2291_v38 }
 0x1be   : > { %v454_v24 = vpop.permute.xlu1 %453  ;;  %v465_v2 = vpop.permute.xlu0 %464 }
 0x1bf   : > { %v470_v37 = vadd.f32 %v465_v2, %v457_v31  ;;  %v458_v41 = vadd.f32 %v454_v24, %v445_v36  ;;  %v982_v31 = vstv %s2723_s4  ;;  %s2728_s4 = sld [smem:[#allocation72_spill]] }
 0x1c0   : > { %876 = vrot.lane.b32.xlu0 %v872_v25, %s2678_s0  ;;  %865 = vrot.lane.b32.xlu1 %v860_v26, %s2684_s1  ;;  %v958_v26 = vmul.f32 %v956_v11, %v2298_v6  ;;  %v983_v39 = vmul.f32 %v982_v31, %v2291_v38 }
 0x1c2   : > { %v467_v32 = vpop.permute.xlu1 %466  ;;  %v478_v33 = vpop.permute.xlu0 %477 }
 0x1c3   : > { %v483_v44 = vadd.f32 %v478_v33, %v470_v37  ;;  %v471_v50 = vadd.f32 %v467_v32, %v458_v41  ;;  %v585_v32 = vstv %s2724_s5  ;;  %v971_v37 = vmul.f32 %v969_v19, %v2298_v6  ;;  %s2729_s5 = sld [smem:[#allocation73_spill]] }
 0x1c4   : > { %889 = vrot.lane.b32.xlu0 %v885_v34, %s2679_s2  ;;  %878 = vrot.lane.b32.xlu1 %v873_v35, %s2678_s0  ;;  %v586_v40 = vmul.f32 %v585_v32, %v2143_v60  ;;  %v587_v52 = vmul.f32 %v585_v32, %v2150_v1  ;;  %v2328_v60 = vld [vmem:[#allocation2 + $0x1a] sm:$0xff] }
 0x1c6   : > { %v480_v45 = vpop.permute.xlu1 %479  ;;  %v491_v46 = vpop.permute.xlu0 %490 }
 0x1c7   : > { %v496_v51 = vadd.f32 %v491_v46, %v483_v44  ;;  %v484_v53 = vadd.f32 %v480_v45, %v471_v50  ;;  %v995_v45 = vstv %s2725_s6  ;;  %v984_v50 = vmul.f32 %v982_v31, %v2298_v6  ;;  %s2730_s6 = sld [smem:[#allocation74_spill]] }
 0x1c8   : > { %902 = vrot.lane.b32.xlu0 %v898_v43, %s2680_s16  ;;  %891 = vrot.lane.b32.xlu1 %v886_v48, %s2679_s2 }
 0x1c9   : > { %v503_v54 = vadd.f32 %v501_v49, %v496_v51  ;;  %v996_v51 = vmul.f32 %v995_v45, %v2291_v38  ;;  %v1054_v11 = vstv %s2729_s5  ;;  %s2734_s5 = sld [smem:[#allocation78_spill]] }
 0x1ca   : > { %v493_v55 = vpop.permute.xlu1 %492  ;;  %v511_v56 = vpop.permute.xlu0 %510 }
 0x1cb   : > { %v497_v59 = vadd.f32 %v493_v55, %v484_v53  ;;  %v516_v12 = vadd.f32 %v511_v56, %v503_v54  ;;  %v1015_v54 = vstv %s2726_s7  ;;  %s2731_s7 = sld [smem:[#allocation41_spill]] }
 0x1cc   : > { %915 = vrot.lane.b32.xlu0 %v911_v47, %s2681_s11  ;;  %904 = vrot.lane.b32.xlu1 %v899_v57, %s2680_s16  ;;  %v997_v57 = vmul.f32 %v995_v45, %v2298_v6 }
 0x1cd   : > { %v504_v63 = vadd.f32 %v502_v58, %v497_v59  ;;  %v1016_v58 = vmul.f32 %v1015_v54, %v2328_v60  ;;  %v2335_v59 = vld [vmem:[#allocation2 + $0x22] sm:$0xff] }
 0x1ce   : > { %v513_v0 = vpop.permute.xlu1 %512  ;;  %v524_v3 = vpop.permute.xlu0 %523 }
 0x1cf   : > { %v529_v17 = vadd.f32 %v524_v3, %v516_v12  ;;  %v517_v21 = vadd.f32 %v513_v0, %v504_v63  ;;  %v1017_v0 = vmul.f32 %v1015_v54, %v2335_v59  ;;  %v1029_v3 = vmul.f32 %v1028_v61, %v2328_v60 }
 0x1d0   : > { %935 = vrot.lane.b32.xlu0 %v931_v4, %s2677_s15  ;;  %917 = vrot.lane.b32.xlu1 %v912_v5, %s2681_s11  ;;  %v1041_v4 = vstv %s2728_s4  ;;  %s2733_s4 = sld [smem:[#allocation77_spill]]  ;;  %v1113_v54 = vstv %s2734_s5  ;;  %s2739_s5 = sld [smem:[#allocation82_spill]] }
 0x1d2   : > { %v526_v42 = vpop.permute.xlu1 %525  ;;  %v537_v8 = vpop.permute.xlu0 %536 }
 0x1d3   : > { %v542_v24 = vadd.f32 %v537_v8, %v529_v17  ;;  %v530_v29 = vadd.f32 %v526_v42, %v517_v21  ;;  %v1030_v8 = vmul.f32 %v1028_v61, %v2335_v59  ;;  %v1055_v17 = vmul.f32 %v1054_v11, %v2328_v60 }
 0x1d4   : > { %937 = vrot.lane.b32.xlu1 %v932_v9, %s2677_s15  ;;  %948 = vrot.lane.b32.xlu0 %v944_v10, %s2684_s1  ;;  %v1042_v9 = vmul.f32 %v1041_v4, %v2328_v60 }
 0x1d6   : > { %v539_v62 = vpop.permute.xlu1 %538  ;;  %v550_v22 = vpop.permute.xlu0 %549 }
 0x1d7   : > { %v555_v30 = vadd.f32 %v550_v22, %v542_v24  ;;  %v543_v33 = vadd.f32 %v539_v62, %v530_v29  ;;  %v1067_v24 = vstv %s2730_s6  ;;  %s2735_s6 = sld [smem:[#allocation79_spill]] }
 0x1d8   : > { %950 = vrot.lane.b32.xlu1 %v945_v15, %s2684_s1  ;;  %961 = vrot.lane.b32.xlu0 %v957_v16, %s2678_s0  ;;  %v1043_v16 = vmul.f32 %v1041_v4, %v2335_v59  ;;  %v1068_v31 = vmul.f32 %v1067_v24, %v2328_v60 }
 0x1da   : > { %v552_v2 = vpop.permute.xlu1 %551  ;;  %v563_v25 = vpop.permute.xlu0 %562 }
 0x1db   : > { %v568_v34 = vadd.f32 %v563_v25, %v555_v30  ;;  %v556_v41 = vadd.f32 %v552_v2, %v543_v33  ;;  %v670_v2 = vstv %s2731_s7  ;;  %v1056_v30 = vmul.f32 %v1054_v11, %v2335_v59  ;;  %s2736_s7 = sld [smem:[#allocation80_spill]] }
 0x1dc   : > { %963 = vrot.lane.b32.xlu1 %v958_v26, %s2678_s0  ;;  %974 = vrot.lane.b32.xlu0 %v970_v28, %s2679_s2  ;;  %v671_v32 = vmul.f32 %v670_v2, %v2177_v20  ;;  %v672_v45 = vmul.f32 %v670_v2, %v2184_v27  ;;  %v2365_v20 = vld [vmem:[#allocation2 + $0x1b] sm:$0xff] }
 0x1de   : > { %v565_v35 = vpop.permute.xlu1 %564  ;;  %v576_v36 = vpop.permute.xlu0 %575 }
 0x1df   : > { %v581_v44 = vadd.f32 %v576_v36, %v568_v34  ;;  %v569_v46 = vadd.f32 %v565_v35, %v556_v41  ;;  %v1080_v35 = vstv %s2732_s17  ;;  %v1069_v41 = vmul.f32 %v1067_v24, %v2335_v59  ;;  %s2737_s17 = sld [smem:[#allocation81_spill]] }
 0x1e0   : > { %976 = vrot.lane.b32.xlu1 %v971_v37, %s2679_s2  ;;  %987 = vrot.lane.b32.xlu0 %v983_v39, %s2680_s16 }
 0x1e1   : > { %v588_v43 = vadd.f32 %v586_v40, %v581_v44  ;;  %v1081_v44 = vmul.f32 %v1080_v35, %v2328_v60  ;;  %v1139_v4 = vstv %s2736_s7  ;;  %s2741_s7 = sld [smem:[#allocation85_spill]] }
 0x1e2   : > { %v578_v48 = vpop.permute.xlu1 %577  ;;  %v596_v49 = vpop.permute.xlu0 %595 }
 0x1e3   : > { %v582_v53 = vadd.f32 %v578_v48, %v569_v46  ;;  %v601_v5 = vadd.f32 %v596_v49, %v588_v43  ;;  %v1100_v43 = vstv %s2733_s4  ;;  %s2738_s4 = sld [smem:[#allocation48_spill]] }
 0x1e4   : > { %989 = vrot.lane.b32.xlu1 %v984_v50, %s2680_s16  ;;  %1000 = vrot.lane.b32.xlu0 %v996_v51, %s2681_s11  ;;  %v1082_v51 = vmul.f32 %v1080_v35, %v2335_v59 }
 0x1e5   : > { %v589_v55 = vadd.f32 %v587_v52, %v582_v53  ;;  %v1101_v52 = vmul.f32 %v1100_v43, %v2365_v20  ;;  %v2372_v53 = vld [vmem:[#allocation2 + $0x23] sm:$0xff] }
 0x1e6   : > { %v598_v56 = vpop.permute.xlu1 %597  ;;  %v609_v47 = vpop.permute.xlu0 %608 }
 0x1e7   : > { %v614_v10 = vadd.f32 %v609_v47, %v601_v5  ;;  %v602_v12 = vadd.f32 %v598_v56, %v589_v55  ;;  %v1102_v56 = vmul.f32 %v1100_v43, %v2372_v53  ;;  %v1114_v47 = vmul.f32 %v1113_v54, %v2365_v20 }
 0x1e8   : > { %1002 = vrot.lane.b32.xlu1 %v997_v57, %s2681_s11  ;;  %1020 = vrot.lane.b32.xlu0 %v1016_v58, %s2677_s15  ;;  %v1126_v57 = vstv %s2735_s6  ;;  %s2740_s6 = sld [smem:[#allocation84_spill]] }
 0x1ea   : > { %v611_v1 = vpop.permute.xlu1 %610  ;;  %v622_v63 = vpop.permute.xlu0 %621 }
 0x1eb   : > { %v627_v62 = vadd.f32 %v622_v63, %v614_v10  ;;  %v615_v19 = vadd.f32 %v611_v1, %v602_v12  ;;  %v1115_v63 = vmul.f32 %v1113_v54, %v2372_v53  ;;  %v1140_v10 = vmul.f32 %v1139_v4, %v2365_v20 }
 0x1ec   : > { %1022 = vrot.lane.b32.xlu1 %v1017_v0, %s2677_s15  ;;  %1033 = vrot.lane.b32.xlu0 %v1029_v3, %s2684_s1  ;;  %v1127_v0 = vmul.f32 %v1126_v57, %v2365_v20 }
 0x1ee   : > { %v624_v7 = vpop.permute.xlu1 %623  ;;  %v635_v42 = vpop.permute.xlu0 %634 }
 0x1ef   : > { %v640_v21 = vadd.f32 %v635_v42, %v627_v62  ;;  %v628_v25 = vadd.f32 %v624_v7, %v615_v19  ;;  %v1152_v62 = vstv %s2737_s17  ;;  %s2742_s17 = sld [smem:[#allocation86_spill]] }
 0x1f0   : > { %1035 = vrot.lane.b32.xlu1 %v1030_v8, %s2684_s1  ;;  %1046 = vrot.lane.b32.xlu0 %v1042_v9, %s2678_s0  ;;  %v1128_v9 = vmul.f32 %v1126_v57, %v2372_v53  ;;  %v1153_v24 = vmul.f32 %v1152_v62, %v2365_v20 }
 0x1f2   : > { %v637_v22 = vpop.permute.xlu1 %636  ;;  %v648_v15 = vpop.permute.xlu0 %647 }
 0x1f3   : > { %v653_v26 = vadd.f32 %v648_v15, %v640_v21  ;;  %v641_v33 = vadd.f32 %v637_v22, %v628_v25  ;;  %v755_v22 = vstv %s2738_s4  ;;  %v1141_v21 = vmul.f32 %v1139_v4, %v2372_v53  ;;  %s2743_s4 = sld [smem:[#allocation87_spill]] }
 0x1f4   : > { %1048 = vrot.lane.b32.xlu1 %v1043_v16, %s2678_s0  ;;  %1059 = vrot.lane.b32.xlu0 %v1055_v17, %s2679_s2  ;;  %v756_v2 = vmul.f32 %v755_v22, %v2217_v13  ;;  %v757_v35 = vmul.f32 %v755_v22, %v2224_v23  ;;  %v2409_v23 = vld [vmem:[#allocation2 + $0x24] sm:$0xff] }
 0x1f6   : > { %v650_v28 = vpop.permute.xlu1 %649  ;;  %v661_v29 = vpop.permute.xlu0 %660 }
 0x1f7   : > { %v666_v34 = vadd.f32 %v661_v29, %v653_v26  ;;  %v654_v36 = vadd.f32 %v650_v28, %v641_v33  ;;  %v1165_v28 = vstv %s2739_s5  ;;  %v1154_v33 = vmul.f32 %v1152_v62, %v2372_v53  ;;  %s2744_s5 = sld [smem:[#allocation88_spill]] }
 0x1f8   : > { %1061 = vrot.lane.b32.xlu1 %v1056_v30, %s2679_s2  ;;  %1072 = vrot.lane.b32.xlu0 %v1068_v31, %s2680_s16 }
 0x1f9   : > { %v673_v37 = vadd.f32 %v671_v32, %v666_v34  ;;  %v1166_v34 = vmul.f32 %v1165_v28, %v2365_v20 }
 0x1fa   : > { %v663_v39 = vpop.permute.xlu1 %662  ;;  %v681_v40 = vpop.permute.xlu0 %680 }
 0x1fb   : > { %v667_v46 = vadd.f32 %v663_v39, %v654_v36  ;;  %v686_v58 = vadd.f32 %v681_v40, %v673_v37  ;;  %v2402_v37 = vld [vmem:[#allocation2 + $0x1c] sm:$0xff]  ;;  %v1185_v39 = vstv %s2740_s6  ;;  %s2745_s6 = sld [smem:[#allocation55_spill]] }
 0x1fc   : > { %1074 = vrot.lane.b32.xlu1 %v1069_v41, %s2680_s16  ;;  %1085 = vrot.lane.b32.xlu0 %v1081_v44, %s2681_s11 }
 0x1fd   : > { %v674_v48 = vadd.f32 %v672_v45, %v667_v46  ;;  %v1167_v45 = vmul.f32 %v1165_v28, %v2372_v53  ;;  %v1186_v46 = vmul.f32 %v1185_v39, %v2402_v37 }
 0x1fe   : > { %v683_v49 = vpop.permute.xlu1 %682  ;;  %v694_v50 = vpop.permute.xlu0 %693 }
 0x1ff   : > { %v699_v3 = vadd.f32 %v694_v50, %v686_v58  ;;  %v687_v5 = vadd.f32 %v683_v49, %v674_v48  ;;  %v1198_v49 = vstv %s2741_s7  ;;  %s2746_s7 = sld [smem:[#allocation89_spill]] }
 0x200   : > { %1087 = vrot.lane.b32.xlu1 %v1082_v51, %s2681_s11  ;;  %1105 = vrot.lane.b32.xlu0 %v1101_v52, %s2677_s15  ;;  %v1187_v52 = vmul.f32 %v1185_v39, %v2409_v23  ;;  %v1199_v54 = vmul.f32 %v1198_v49, %v2402_v37  ;;  %v1200_v58 = vmul.f32 %v1198_v49, %v2409_v23 }
 0x202   : > { %v696_v27 = vpop.permute.xlu1 %695  ;;  %v707_v55 = vpop.permute.xlu0 %706 }
 0x203   : > { %v712_v7 = vadd.f32 %v707_v55, %v699_v3  ;;  %v700_v11 = vadd.f32 %v696_v27, %v687_v5 }
 0x204   : > { %1107 = vrot.lane.b32.xlu1 %v1102_v56, %s2677_s15  ;;  %1118 = vrot.lane.b32.xlu0 %v1114_v47, %s2684_s1  ;;  %v1211_v56 = vstv %s2742_s17  ;;  %s2747_s17 = sld [smem:[#allocation91_spill]] }
 0x205   : > { %v1213_v5 = vmul.f32 %v1211_v56, %v2409_v23 }
 0x206   : > { %v709_v61 = vpop.permute.xlu1 %708  ;;  %v720_v1 = vpop.permute.xlu0 %719 }
 0x207   : > { %v725_v12 = vadd.f32 %v720_v1, %v712_v7  ;;  %v713_v15 = vadd.f32 %v709_v61, %v700_v11  ;;  %v1212_v61 = vmul.f32 %v1211_v56, %v2402_v37  ;;  %v1309_v56 = vstv %s1957_s20 }
 0x208   : > { %1120 = vrot.lane.b32.xlu1 %v1115_v63, %s2684_s1  ;;  %1131 = vrot.lane.b32.xlu0 %v1127_v0, %s2678_s0  ;;  %v1224_v0 = vstv %s2743_s4  ;;  %s2748_s4 = sld [smem:[#allocation92_spill]] }
 0x209   : > { %v1225_v7 = vmul.f32 %v1224_v0, %v2402_v37  ;;  %v1226_v62 = vmul.f32 %v1224_v0, %v2409_v23 }
 0x20a   : > { %v722_v42 = vpop.permute.xlu1 %721  ;;  %v733_v8 = vpop.permute.xlu0 %732 }
 0x20b   : > { %v738_v16 = vadd.f32 %v733_v8, %v725_v12  ;;  %v726_v25 = vadd.f32 %v722_v42, %v713_v15 }
 0x20c   : > { %1133 = vrot.lane.b32.xlu1 %v1128_v9, %s2678_s0  ;;  %1144 = vrot.lane.b32.xlu0 %v1140_v10, %s2679_s2  ;;  %v1237_v9 = vstv %s2744_s5  ;;  %v840_v10 = vstv %s2745_s6  ;;  %s2749_s5 = sld [smem:[#allocation93_spill]]  ;;  %s2750_s6 = sld [smem:[#allocation62_spill]] }
 0x20d   : > { %v1238_v22 = vmul.f32 %v1237_v9, %v2402_v37  ;;  %v842_v28 = vmul.f32 %v840_v10, %v2262_v14  ;;  %v2446_v14 = vld [vmem:[#allocation2 + $0x25] sm:$0xff] }
 0x20e   : > { %v735_v17 = vpop.permute.xlu1 %734  ;;  %v746_v19 = vpop.permute.xlu0 %745 }
 0x20f   : > { %v751_v26 = vadd.f32 %v746_v19, %v738_v16  ;;  %v739_v29 = vadd.f32 %v735_v17, %v726_v25  ;;  %v841_v16 = vmul.f32 %v840_v10, %v2254_v18  ;;  %v1250_v19 = vstv %s2746_s7  ;;  %s2751_s7 = sld [smem:[#allocation95_spill]] }
 0x210   : > { %1146 = vrot.lane.b32.xlu1 %v1141_v21, %s2679_s2  ;;  %1157 = vrot.lane.b32.xlu0 %v1153_v24, %s2680_s16  ;;  %v1239_v25 = vmul.f32 %v1237_v9, %v2409_v23  ;;  %v1270_v18 = vstv %s2747_s17  ;;  %v1335_v10 = vstv %s1961_s10  ;;  %s2752_s17 = sld [smem:[#allocation69_spill]] }
 0x211   : > { %v758_v30 = vadd.f32 %v756_v2, %v751_v26  ;;  %v1251_v26 = vmul.f32 %v1250_v19, %v2402_v37 }
 0x212   : > { %v748_v31 = vpop.permute.xlu1 %747  ;;  %v766_v32 = vpop.permute.xlu0 %765  ;;  %v1296_v49 = vstv %s2749_s5  ;;  %v925_v0 = vstv %s2750_s6 }
 0x213   : > { %v752_v13 = vadd.f32 %v748_v31, %v739_v29  ;;  %v771_v36 = vadd.f32 %v766_v32, %v758_v30  ;;  %v2439_v31 = vld [vmem:[#allocation2 + $0x1d] sm:$0xff] }
 0x214   : > { %1159 = vrot.lane.b32.xlu1 %v1154_v33, %s2680_s16  ;;  %1170 = vrot.lane.b32.xlu0 %v1166_v34, %s2681_s11 }
 0x215   : > { %v759_v40 = vadd.f32 %v757_v35, %v752_v13  ;;  %v1252_v35 = vmul.f32 %v1250_v19, %v2409_v23  ;;  %v1271_v13 = vmul.f32 %v1270_v18, %v2439_v31 }
 0x216   : > { %v768_v41 = vpop.permute.xlu1 %767  ;;  %v779_v44 = vpop.permute.xlu0 %778 }
 0x217   : > { %v772_v43 = vadd.f32 %v768_v41, %v759_v40  ;;  %v784_v48 = vadd.f32 %v779_v44, %v771_v36  ;;  %v1283_v40 = vstv %s2748_s4  ;;  %s2759_s4 = sld [smem:[#allocation96_spill]] }
 0x218   : > { %1172 = vrot.lane.b32.xlu1 %v1167_v45, %s2681_s11  ;;  %1190 = vrot.lane.b32.xlu0 %v1186_v46, %s2677_s15  ;;  %v1272_v45 = vmul.f32 %v1270_v18, %v2446_v14  ;;  %v1284_v46 = vmul.f32 %v1283_v40, %v2439_v31 }
 0x21a   : > { %v781_v50 = vpop.permute.xlu1 %780  ;;  %v792_v51 = vpop.permute.xlu0 %791 }
 0x21b   : > { %v785_v27 = vadd.f32 %v781_v50, %v772_v43  ;;  %v797_v55 = vadd.f32 %v792_v51, %v784_v48 }
 0x21c   : > { %1192 = vrot.lane.b32.xlu1 %v1187_v52, %s2677_s15  ;;  %1203 = vrot.lane.b32.xlu0 %v1199_v54, %s2684_s1  ;;  %v1285_v52 = vmul.f32 %v1283_v40, %v2446_v14  ;;  %v1297_v54 = vmul.f32 %v1296_v49, %v2439_v31 }
 0x21d   : > { %s2760_s5 = sshll.u32 %s2759_s4, 6 }
 0x21e   : > { %v794_v47 = vpop.permute.xlu1 %793  ;;  %v805_v57 = vpop.permute.xlu0 %804  ;;  %s1465_s6 = scalar_lea.vmem [#allocation10], %s2760_s5 }
 0x21f   : > { %v798_v1 = vadd.f32 %v794_v47, %v785_v27  ;;  %v810_v63 = vadd.f32 %v805_v57, %v797_v55 }
 0x220   : > { %1205 = vrot.lane.b32.xlu1 %v1200_v58, %s2684_s1  ;;  %1216 = vrot.lane.b32.xlu0 %v1212_v61, %s2678_s0  ;;  %v1298_v58 = vmul.f32 %v1296_v49, %v2446_v14  ;;  %v1310_v61 = vmul.f32 %v1309_v56, %v2439_v31 }
 0x222   : > { %v807_v3 = vpop.permute.xlu1 %806  ;;  %v818_v4 = vpop.permute.xlu0 %817 }
 0x223   : > { %v811_v42 = vadd.f32 %v807_v3, %v798_v1  ;;  %v823_v8 = vadd.f32 %v818_v4, %v810_v63  ;;  %v1322_v63 = vstv %s1959_s14 }
 0x224   : > { %1218 = vrot.lane.b32.xlu1 %v1213_v5, %s2678_s0  ;;  %1229 = vrot.lane.b32.xlu0 %v1225_v7, %s2679_s2  ;;  %v1311_v7 = vmul.f32 %v1309_v56, %v2446_v14 }
 0x226   : > { %v820_v11 = vpop.permute.xlu1 %819  ;;  %v831_v12 = vpop.permute.xlu0 %830 }
 0x227   : > { %v824_v15 = vadd.f32 %v820_v11, %v811_v42  ;;  %v836_v17 = vadd.f32 %v831_v12, %v823_v8  ;;  %v1323_v42 = vmul.f32 %v1322_v63, %v2439_v31  ;;  %v926_v8 = vmul.f32 %v925_v0, %v2291_v38 }
 0x228   : > { %1231 = vrot.lane.b32.xlu1 %v1226_v62, %s2679_s2  ;;  %1242 = vrot.lane.b32.xlu0 %v1238_v22, %s2680_s16  ;;  %v1355_v38 = vstv %s1965_s8 }
 0x229   : > { %v843_v21 = vadd.f32 %v841_v16, %v836_v17  ;;  %v1336_v16 = vmul.f32 %v1335_v10, %v2439_v31  ;;  %v927_v17 = vmul.f32 %v925_v0, %v2298_v6 }
 0x22a   : > { %v833_v24 = vpop.permute.xlu1 %832  ;;  %v851_v2 = vpop.permute.xlu0 %850 }
 0x22b   : > { %v837_v29 = vadd.f32 %v833_v24, %v824_v15  ;;  %v856_v30 = vadd.f32 %v851_v2, %v843_v21  ;;  %v1324_v15 = vmul.f32 %v1322_v63, %v2446_v14  ;;  %v2476_v21 = vld [vmem:[#allocation2 + $0x1e] sm:$0xff] }
 0x22c   : > { %1244 = vrot.lane.b32.xlu1 %v1239_v25, %s2680_s16  ;;  %1255 = vrot.lane.b32.xlu0 %v1251_v26, %s2681_s11  ;;  %v1337_v26 = vmul.f32 %v1335_v10, %v2446_v14 }
 0x22d   : > { %v844_v32 = vadd.f32 %v842_v28, %v837_v29  ;;  %v1356_v28 = vmul.f32 %v1355_v38, %v2476_v21  ;;  %v2483_v29 = vld [vmem:[#allocation2 + $0x26] sm:$0xff] }
 0x22e   : > { %v853_v33 = vpop.permute.xlu1 %852  ;;  %v864_v34 = vpop.permute.xlu0 %863 }
 0x22f   : > { %v857_v36 = vadd.f32 %v853_v33, %v844_v32  ;;  %v869_v39 = vadd.f32 %v864_v34, %v856_v30  ;;  %v1368_v30 = vstv %s2751_s7  ;;  %v1357_v32 = vmul.f32 %v1355_v38, %v2483_v29 }
 0x230   : > { %1257 = vrot.lane.b32.xlu1 %v1252_v35, %s2681_s11  ;;  %1275 = vrot.lane.b32.xlu0 %v1271_v13, %s2677_s15  ;;  %v1369_v33 = vmul.f32 %v1368_v30, %v2476_v21  ;;  %v1381_v34 = vstv %s1969_s3 }
 0x231   : > { %v1382_v40 = vmul.f32 %v1381_v34, %v2476_v21  ;;  %v1383_v49 = vmul.f32 %v1381_v34, %v2483_v29 }
 0x232   : > { %v866_v41 = vpop.permute.xlu1 %865  ;;  %v877_v44 = vpop.permute.xlu0 %876 }
 0x233   : > { %v870_v43 = vadd.f32 %v866_v41, %v857_v36  ;;  %v882_v48 = vadd.f32 %v877_v44, %v869_v39  ;;  %v1370_v39 = vmul.f32 %v1368_v30, %v2483_v29  ;;  %v1394_v44 = vstv %s1971_s13 }
 0x234   : > { %1277 = vrot.lane.b32.xlu1 %v1272_v45, %s2677_s15  ;;  %1288 = vrot.lane.b32.xlu0 %v1284_v46, %s2684_s1 }
 0x236   : > { %v879_v50 = vpop.permute.xlu1 %878  ;;  %v890_v51 = vpop.permute.xlu0 %889 }
 0x237   : > { %v883_v27 = vadd.f32 %v879_v50, %v870_v43  ;;  %v895_v55 = vadd.f32 %v890_v51, %v882_v48  ;;  %v1395_v50 = vmul.f32 %v1394_v44, %v2476_v21 }
 0x238   : > { %1290 = vrot.lane.b32.xlu1 %v1285_v52, %s2684_s1  ;;  %1301 = vrot.lane.b32.xlu0 %v1297_v54, %s2678_s0  ;;  %v1407_v54 = vstv %s1973_s12 }
 0x23a   : > { %v892_v47 = vpop.permute.xlu1 %891  ;;  %v903_v57 = vpop.permute.xlu0 %902 }
 0x23b   : > { %v896_v1 = vadd.f32 %v892_v47, %v883_v27  ;;  %v908_v3 = vadd.f32 %v903_v57, %v895_v55  ;;  %v1010_v27 = vstv %s2752_s17 }
 0x23c   : > { %1303 = vrot.lane.b32.xlu1 %v1298_v58, %s2678_s0  ;;  %1314 = vrot.lane.b32.xlu0 %v1310_v61, %s2679_s2  ;;  %v1396_v58 = vmul.f32 %v1394_v44, %v2483_v29  ;;  %v1408_v61 = vmul.f32 %v1407_v54, %v2476_v21  ;;  %v1011_v0 = vmul.f32 %v1010_v27, %v2328_v60 }
 0x23e   : > { %v905_v4 = vpop.permute.xlu1 %904  ;;  %v916_v5 = vpop.permute.xlu0 %915 }
 0x23f   : > { %v921_v9 = vadd.f32 %v916_v5, %v908_v3  ;;  %v909_v11 = vadd.f32 %v905_v4, %v896_v1  ;;  %v1420_v3 = vstv %s1975_s26 }
 0x240   : > { %1316 = vrot.lane.b32.xlu1 %v1311_v7, %s2679_s2  ;;  %1327 = vrot.lane.b32.xlu0 %v1323_v42, %s2680_s16 }
 0x241   : > { %v928_v12 = vadd.f32 %v926_v8, %v921_v9  ;;  %v1409_v8 = vmul.f32 %v1407_v54, %v2483_v29  ;;  %v1421_v9 = vmul.f32 %v1420_v3, %v2476_v21 }
 0x242   : > { %v918_v62 = vpop.permute.xlu1 %917  ;;  %v936_v22 = vpop.permute.xlu0 %935 }
 0x243   : > { %v922_v19 = vadd.f32 %v918_v62, %v909_v11  ;;  %v941_v35 = vadd.f32 %v936_v22, %v928_v12  ;;  %v1012_v11 = vmul.f32 %v1010_v27, %v2335_v59  ;;  %v1422_v22 = vmul.f32 %v1420_v3, %v2483_v29 }
 0x244   : > { %1329 = vrot.lane.b32.xlu1 %v1324_v15, %s2680_s16  ;;  %1340 = vrot.lane.b32.xlu0 %v1336_v16, %s2681_s11 }
 0x245   : > { %v929_v24 = vadd.f32 %v927_v17, %v922_v19 }
 0x246   : > { %v938_v2 = vpop.permute.xlu1 %937  ;;  %v949_v25 = vpop.permute.xlu0 %948 }
 0x247   : > { %v954_v41 = vadd.f32 %v949_v25, %v941_v35  ;;  %v942_v45 = vadd.f32 %v938_v2, %v929_v24 }
 0x248   : > { %1342 = vrot.lane.b32.xlu1 %v1337_v26, %s2681_s11  ;;  %1360 = vrot.lane.b32.xlu0 %v1356_v28, %s2677_s15 }
 0x24a   : > { %v951_v6 = vpop.permute.xlu1 %950  ;;  %v962_v18 = vpop.permute.xlu0 %961 }
 0x24b   : > { %v967_v46 = vadd.f32 %v962_v18, %v954_v41  ;;  %v955_v51 = vadd.f32 %v951_v6, %v942_v45 }
 0x24c   : > { %1362 = vrot.lane.b32.xlu1 %v1357_v32, %s2677_s15  ;;  %1373 = vrot.lane.b32.xlu0 %v1369_v33, %s2684_s1  ;;  %s2754_s15 = sld [smem:[#allocation83_spill]] }
 0x24e   : > { %v964_v13 = vpop.permute.xlu1 %963  ;;  %v975_v36 = vpop.permute.xlu0 %974 }
 0x24f   : > { %v980_v52 = vadd.f32 %v975_v36, %v967_v46  ;;  %v968_v55 = vadd.f32 %v964_v13, %v955_v51 }
 0x250   : > { %1375 = vrot.lane.b32.xlu1 %v1370_v39, %s2684_s1  ;;  %1386 = vrot.lane.b32.xlu0 %v1382_v40, %s2678_s0  ;;  %s2756_s1 = sld [smem:[#allocation94_spill]] }
 0x252   : > { %v977_v43 = vpop.permute.xlu1 %976  ;;  %v988_v48 = vpop.permute.xlu0 %987 }
 0x253   : > { %v993_v56 = vadd.f32 %v988_v48, %v980_v52  ;;  %v981_v1 = vadd.f32 %v977_v43, %v968_v55 }
 0x254   : > { %1388 = vrot.lane.b32.xlu1 %v1383_v49, %s2678_s0  ;;  %1399 = vrot.lane.b32.xlu0 %v1395_v50, %s2679_s2  ;;  %s2757_s0 = sld [smem:[#allocation15_spill]] }
 0x256   : > { %v990_v47 = vpop.permute.xlu1 %989  ;;  %v1001_v57 = vpop.permute.xlu0 %1000 }
 0x257   : > { %v1006_v63 = vadd.f32 %v1001_v57, %v993_v56  ;;  %v994_v4 = vadd.f32 %v990_v47, %v981_v1  ;;  %v1180_v1 = vstv %s2754_s15 }
 0x258   : > { %1401 = vrot.lane.b32.xlu1 %v1396_v58, %s2679_s2  ;;  %1412 = vrot.lane.b32.xlu0 %v1408_v61, %s2680_s16  ;;  %s2753_s2 = sld [smem:[#allocation76_spill]] }
 0x259   : > { %v1013_v5 = vadd.f32 %v1011_v0, %v1006_v63 }
 0x25a   : > { %v1003_v7 = vpop.permute.xlu1 %1002  ;;  %v1021_v42 = vpop.permute.xlu0 %1020 }
 0x25b   : > { %v1007_v10 = vadd.f32 %v1003_v7, %v994_v4  ;;  %v1026_v17 = vadd.f32 %v1021_v42, %v1013_v5  ;;  %v1181_v7 = vmul.f32 %v1180_v1, %v2402_v37 }
 0x25c   : > { %1414 = vrot.lane.b32.xlu1 %v1409_v8, %s2680_s16  ;;  %1425 = vrot.lane.b32.xlu0 %v1421_v9, %s2681_s11  ;;  %s2755_s16 = sld [smem:[#allocation90_spill]] }
 0x25d   : > { %v1014_v60 = vadd.f32 %v1012_v11, %v1007_v10 }
 0x25e   : > { %v1023_v12 = vpop.permute.xlu1 %1022  ;;  %v1034_v62 = vpop.permute.xlu0 %1033  ;;  %v1095_v6 = vstv %s2753_s2 }
 0x25f   : > { %v1039_v24 = vadd.f32 %v1034_v62, %v1026_v17  ;;  %v1027_v2 = vadd.f32 %v1023_v12, %v1014_v60  ;;  %v1096_v36 = vmul.f32 %v1095_v6, %v2365_v20  ;;  %v1097_v46 = vmul.f32 %v1095_v6, %v2372_v53 }
 0x260   : > { %1427 = vrot.lane.b32.xlu1 %v1422_v22, %s2681_s11  ;;  %v1182_v60 = vmul.f32 %v1180_v1, %v2409_v23  ;;  %s2758_s11 = sld [smem:[#allocation16_spill]] }
 0x262   : > { %v1036_v15 = vpop.permute.xlu1 %1035  ;;  %v1047_v16 = vpop.permute.xlu0 %1046 }
 0x263   : > { %v1052_v59 = vadd.f32 %v1047_v16, %v1039_v24  ;;  %v1040_v28 = vadd.f32 %v1036_v15, %v1027_v2 }
 0x266   : > { %v1049_v19 = vpop.permute.xlu1 %1048  ;;  %v1060_v38 = vpop.permute.xlu0 %1059 }
 0x267   : > { %v1065_v30 = vadd.f32 %v1060_v38, %v1052_v59  ;;  %v1053_v18 = vadd.f32 %v1049_v19, %v1040_v28 }
 0x26a   : > { %v1062_v25 = vpop.permute.xlu1 %1061  ;;  %v1073_v26 = vpop.permute.xlu0 %1072 }
 0x26b   : > { %v1078_v32 = vadd.f32 %v1073_v26, %v1065_v30  ;;  %v1066_v35 = vadd.f32 %v1062_v25, %v1053_v18  ;;  %v1265_v30 = vstv %s2755_s16 }
 0x26e   : > { %v1075_v33 = vpop.permute.xlu1 %1074  ;;  %v1086_v34 = vpop.permute.xlu0 %1085 }
 0x26f   : > { %v1091_v13 = vadd.f32 %v1086_v34, %v1078_v32  ;;  %v1079_v39 = vadd.f32 %v1075_v33, %v1066_v35  ;;  %v1266_v35 = vmul.f32 %v1265_v30, %v2439_v31 }
 0x271   : > { %v1098_v40 = vadd.f32 %v1096_v36, %v1091_v13 }
 0x272   : > { %v1088_v41 = vpop.permute.xlu1 %1087  ;;  %v1106_v44 = vpop.permute.xlu0 %1105 }
 0x273   : > { %v1092_v45 = vadd.f32 %v1088_v41, %v1079_v39  ;;  %v1111_v52 = vadd.f32 %v1106_v44, %v1098_v40  ;;  %v1267_v44 = vmul.f32 %v1265_v30, %v2446_v14 }
 0x275   : > { %v1099_v43 = vadd.f32 %v1097_v46, %v1092_v45 }
 0x276   : > { %v1108_v48 = vpop.permute.xlu1 %1107  ;;  %v1119_v49 = vpop.permute.xlu0 %1118 }
 0x277   : > { %v1124_v55 = vadd.f32 %v1119_v49, %v1111_v52  ;;  %v1112_v56 = vadd.f32 %v1108_v48, %v1099_v43 }
 0x27a   : > { %v1121_v50 = vpop.permute.xlu1 %1120  ;;  %v1132_v51 = vpop.permute.xlu0 %1131 }
 0x27b   : > { %v1137_v47 = vadd.f32 %v1132_v51, %v1124_v55  ;;  %v1125_v58 = vadd.f32 %v1121_v50, %v1112_v56 }
 0x27e   : > { %v1134_v54 = vpop.permute.xlu1 %1133  ;;  %v1145_v27 = vpop.permute.xlu0 %1144 }
 0x27f   : > { %v1150_v61 = vadd.f32 %v1145_v27, %v1137_v47  ;;  %v1138_v63 = vadd.f32 %v1134_v54, %v1125_v58 }
 0x282   : > { %v1147_v20 = vpop.permute.xlu1 %1146  ;;  %v1158_v57 = vpop.permute.xlu0 %1157 }
 0x283   : > { %v1163_v0 = vadd.f32 %v1158_v57, %v1150_v61  ;;  %v1151_v4 = vadd.f32 %v1147_v20, %v1138_v63  ;;  %v1350_v57 = vstv %s2756_s1 }
 0x286   : > { %v1160_v53 = vpop.permute.xlu1 %1159  ;;  %v1171_v3 = vpop.permute.xlu0 %1170 }
 0x287   : > { %v1176_v5 = vadd.f32 %v1171_v3, %v1163_v0  ;;  %v1164_v42 = vadd.f32 %v1160_v53, %v1151_v4  ;;  %v1351_v53 = vmul.f32 %v1350_v57, %v2476_v21 }
 0x289   : > { %v1183_v8 = vadd.f32 %v1181_v7, %v1176_v5 }
 0x28a   : > { %v1173_v9 = vpop.permute.xlu1 %1172  ;;  %v1191_v10 = vpop.permute.xlu0 %1190 }
 0x28b   : > { %v1177_v11 = vadd.f32 %v1173_v9, %v1164_v42  ;;  %v1196_v17 = vadd.f32 %v1191_v10, %v1183_v8  ;;  %v1352_v8 = vmul.f32 %v1350_v57, %v2483_v29  ;;  %v1456_v57 = vld [vmem:[%s1985_s9 + $0x38] sm:$0xff] }
 0x28d   : > { %v1184_v12 = vadd.f32 %v1182_v60, %v1177_v11 }
 0x28e   : > { %v1193_v62 = vpop.permute.xlu1 %1192  ;;  %v1204_v22 = vpop.permute.xlu0 %1203 }
 0x28f   : > { %v1209_v24 = vadd.f32 %v1204_v22, %v1196_v17  ;;  %v1197_v2 = vadd.f32 %v1193_v62, %v1184_v12 }
 0x292   : > { %v1206_v15 = vpop.permute.xlu1 %1205  ;;  %v1217_v16 = vpop.permute.xlu0 %1216 }
 0x293   : > { %v1222_v59 = vadd.f32 %v1217_v16, %v1209_v24  ;;  %v1210_v26 = vadd.f32 %v1206_v15, %v1197_v2 }
 0x296   : > { %v1219_v19 = vpop.permute.xlu1 %1218  ;;  %v1230_v38 = vpop.permute.xlu0 %1229 }
 0x297   : > { %v1235_v28 = vadd.f32 %v1230_v38, %v1222_v59  ;;  %v1223_v6 = vadd.f32 %v1219_v19, %v1210_v26 }
 0x29a   : > { %v1232_v37 = vpop.permute.xlu1 %1231  ;;  %v1243_v25 = vpop.permute.xlu0 %1242 }
 0x29b   : > { %v1248_v18 = vadd.f32 %v1243_v25, %v1235_v28  ;;  %v1236_v33 = vadd.f32 %v1232_v37, %v1223_v6  ;;  %v1433_v25 = vstv %s2757_s0  ;;  %v1436_v6 = vstv %s2758_s11  ;;  %s178_s0 = sadd.s32 1, %s2759_s4  }
 0x29c   : > { %p175_p2 = scmp.ge.s32.totalorder %s178_s0, 2  }
 0x29e   : > { %v1245_v23 = vpop.permute.xlu1 %1244  ;;  %v1256_v32 = vpop.permute.xlu0 %1255 }
 0x29f   : > { %v1261_v34 = vadd.f32 %v1256_v32, %v1248_v18  ;;  %v1249_v13 = vadd.f32 %v1245_v23, %v1236_v33 }
 0x2a1   : > { %v1268_v36 = vadd.f32 %v1266_v35, %v1261_v34 }
 0x2a2   : > { %v1258_v39 = vpop.permute.xlu1 %1257  ;;  %v1276_v40 = vpop.permute.xlu0 %1275 }
 0x2a3   : > { %v1262_v41 = vadd.f32 %v1258_v39, %v1249_v13  ;;  %v1281_v50 = vadd.f32 %v1276_v40, %v1268_v36 }
 0x2a5   : > { %v1269_v45 = vadd.f32 %v1267_v44, %v1262_v41 }
 0x2a6   : > { %v1278_v46 = vpop.permute.xlu1 %1277  ;;  %v1289_v43 = vpop.permute.xlu0 %1288 }
 0x2a7   : > { %v1294_v54 = vadd.f32 %v1289_v43, %v1281_v50  ;;  %v1282_v27 = vadd.f32 %v1278_v46, %v1269_v45  ;;  %v1453_v50 = vld [vmem:[%s1985_s9 + $0x20] sm:$0xff] }
 0x2aa   : > { %v1291_v48 = vpop.permute.xlu1 %1290  ;;  %v1302_v49 = vpop.permute.xlu0 %1301 }
 0x2ab   : > { %v1307_v55 = vadd.f32 %v1302_v49, %v1294_v54  ;;  %v1295_v47 = vadd.f32 %v1291_v48, %v1282_v27  ;;  %v1449_v48 = vld [vmem:[%s1985_s9] sm:$0xff]  ;;  %v1451_v49 = vld [vmem:[%s1985_s9 + $0x10] sm:$0xff] }
 0x2ae   : > { %v1304_v51 = vpop.permute.xlu1 %1303  ;;  %v1315_v52 = vpop.permute.xlu0 %1314 }
 0x2af   : > { %v1320_v20 = vadd.f32 %v1315_v52, %v1307_v55  ;;  %v1308_v58 = vadd.f32 %v1304_v51, %v1295_v47  ;;  %v1455_v51 = vld [vmem:[%s1985_s9 + $0x30] sm:$0xff]  ;;  %v1452_v47 = vld [vmem:[%s1985_s9 + $0x18] sm:$0xff] }
 0x2b2   : > { %v1317_v31 = vpop.permute.xlu1 %1316  ;;  %v1328_v56 = vpop.permute.xlu0 %1327 }
 0x2b3   : > { %v1333_v61 = vadd.f32 %v1328_v56, %v1320_v20  ;;  %v1321_v63 = vadd.f32 %v1317_v31, %v1308_v58  ;;  %v1450_v56 = vld [vmem:[%s1985_s9 + $0x8] sm:$0xff] }
 0x2b4   : > { %v1454_v20 = vld [vmem:[%s1985_s9 + $0x28] sm:$0xff]  ;;  %s1726_s9 = smov (%p175_p2), [#allocation10]  }
 0x2b5   :  { %s1479_s7 = sshll.u32 (%p175_p2), %s1726_s9, 4  ;;  %s1480_s7 = int_to_ptr.vmem [resolvable:$true] %s1479_s7 }
 0x2b6   : > { %v1330_v14 = vpop.permute.xlu1 %1329  ;;  %v1341_v1 = vpop.permute.xlu0 %1340  ;;  %s1675_s17 = scalar_lea.vmem (%p175_p2), %s1480_s7, 2048  ;;  %p1680_p4 = scmp.lt.s32.totalorder (%p175_p2), %s1480_s7, %s1480_s7 }
 0x2b7   : > { %v1346_v0 = vadd.f32 %v1341_v1, %v1333_v61  ;;  %v1334_v3 = vadd.f32 %v1330_v14, %v1321_v63  ;;  %p1676_p3 = scmp.ne.s32.totalorder (%p175_p2), %s1480_s7, %s1675_s17  ;;  %p1681_p5 = scmp.lt.s32.totalorder (%p175_p2), %s1675_s17, %s1675_s17 }
 0x2b9   : > { %v1353_v4 = vadd.f32 %v1351_v53, %v1346_v0  ;;  %p1682_p6 = por (%p175_p2), %p1681_p5, %p1680_p4 }
 0x2ba   : > { %v1343_v5 = vpop.permute.xlu1 %1342  ;;  %v1361_v7 = vpop.permute.xlu0 %1360 }
 0x2bb   : > { %v1347_v42 = vadd.f32 %v1343_v5, %v1334_v3  ;;  %v1366_v62 = vadd.f32 %v1361_v7, %v1353_v4  ;;  %p1683_p7 = pnand (%p175_p2), %p1682_p6, %p1676_p3 }
 0x2bd   : > { %v1354_v9 = vadd.f32 %v1352_v8, %v1347_v42 }
 0x2be   : > { %v1363_v10 = vpop.permute.xlu1 %1362  ;;  %v1374_v11 = vpop.permute.xlu0 %1373 }
 0x2bf   : > { %v1379_v16 = vadd.f32 %v1374_v11, %v1366_v62  ;;  %v1367_v17 = vadd.f32 %v1363_v10, %v1354_v9 }
 0x2c2   : > { %v1376_v60 = vpop.permute.xlu1 %1375  ;;  %v1387_v12 = vpop.permute.xlu0 %1386 }
 0x2c3   : > { %v1392_v21 = vadd.f32 %v1387_v12, %v1379_v16  ;;  %v1380_v24 = vadd.f32 %v1376_v60, %v1367_v17 }
 0x2c6   : > { %v1389_v22 = vpop.permute.xlu1 %1388  ;;  %v1400_v15 = vpop.permute.xlu0 %1399 }
 0x2c7   : > { %v1405_v2 = vadd.f32 %v1400_v15, %v1392_v21  ;;  %v1393_v59 = vadd.f32 %v1389_v22, %v1380_v24 }
 0x2ca   : > { %v1402_v19 = vpop.permute.xlu1 %1401  ;;  %v1413_v38 = vpop.permute.xlu0 %1412 }
 0x2cb   : > { %v1418_v37 = vadd.f32 %v1413_v38, %v1405_v2  ;;  %v1406_v28 = vadd.f32 %v1402_v19, %v1393_v59 }
 0x2ce   : > { %v1415_v29 = vpop.permute.xlu1 %1414  ;;  %v1426_v26 = vpop.permute.xlu0 %1425 }
 0x2cf   : > { %v1431_v30 = vadd.f32 %v1426_v26, %v1418_v37  ;;  %v1419_v18 = vadd.f32 %v1415_v29, %v1406_v28 }
 0x2d1   : > { %v1434_v23 = vmul.f32 %v1433_v25, %v1431_v30 }
 0x2d2   : > { %v1428_v32 = vpop.permute.xlu1 %1427 }
 0x2d3   : > { %v1437_v33 = vadd.f32 %v1436_v6, %v1434_v23  ;;  %v1432_v34 = vadd.f32 %v1428_v32, %v1419_v18 }
 0x2d5   : > { %v1439_v35 = vsub.f32 0.0, %v1437_v33  ;;  %v1435_v13 = vmul.f32 %v1433_v25, %v1432_v34 }
 0x2d7   : > { %v1441_v36 = vmul.f32 1.442695, %v1439_v35  ;;  %v1438_v39 = vadd.f32 %v1436_v6, %v1435_v13 }
 0x2d9   : > { %1623 = vpow2.f32 %v1441_v36  ;;  %v1440_v40 = vsub.f32 0.0, %v1438_v39 }
 0x2db   : > { %v1443_v41 = vmul.f32 1.442695, %v1440_v40 }
 0x2dd   : > { %1625 = vpow2.f32 %v1443_v41 }
 0x2e3   : > { %v1624_v44 = vpop.eup %1623 }
 0x2e4   : > { %v1445_v45 = vadd.f32 1.0, %v1624_v44 }
 0x2e6   : > { %1627 = vrcp.f32 %v1445_v45 }
 0x2e7   : > { %v1626_v46 = vpop.eup %1625 }
 0x2e8   : > { %v1446_v43 = vadd.f32 1.0, %v1626_v46 }
 0x2ea   : > { %1629 = vrcp.f32 %v1446_v43 }
 0x2f0   : > { %v1628_v52 = vpop.eup %1627 }
 0x2f1   : > { %v1457_v54 = vmul.f32 %v1628_v52, %v1449_v48  ;;  %v1459_v27 = vmul.f32 %v1628_v52, %v1451_v49  ;;  %v1461_v55 = vmul.f32 %v1628_v52, %v1453_v50  ;;  %v1463_v31 = vmul.f32 %v1628_v52, %v1455_v51 }
 0x2f2   :  { %177 = sbr.rel (!%p175_p2) target bundleno = 138 (0x8a), region = 54 }
 0x2f3   : > { %1466 = vst.msk [vmem:[%s1465_s6] sm:$0xff] %vm189_vm5, %v1457_v54  ;;  %1468 = vst.msk [vmem:[%s1465_s6 + $0x10] sm:$0xff] %vm189_vm5, %v1459_v27 }
 0x2f4   : > { %1470 = vst.msk [vmem:[%s1465_s6 + $0x20] sm:$0xff] %vm189_vm5, %v1461_v55  ;;  %1472 = vst.msk [vmem:[%s1465_s6 + $0x30] sm:$0xff] %vm189_vm5, %v1463_v31  ;;  %v1630_v58 = vpop.eup %1629 }
 0x2f5   : > { %v1458_v61 = vmul.f32 %v1630_v58, %v1450_v56  ;;  %v1460_v14 = vmul.f32 %v1630_v58, %v1452_v47  ;;  %v1462_v1 = vmul.f32 %v1630_v58, %v1454_v20  ;;  %v1464_v63 = vmul.f32 %v1630_v58, %v1456_v57 }
 0x2f7   : > { %1467 = vst.msk [vmem:[%s1465_s6 + $0x8] sm:$0xff] %vm189_vm5, %v1458_v61  ;;  %1469 = vst.msk [vmem:[%s1465_s6 + $0x18] sm:$0xff] %vm189_vm5, %v1460_v14 }
 0x2f8   : > { %1471 = vst.msk [vmem:[%s1465_s6 + $0x28] sm:$0xff] %vm189_vm5, %v1462_v1  ;;  %1473 = vst.msk [vmem:[%s1465_s6 + $0x38] sm:$0xff] %vm189_vm5, %v1464_v63 }
 0x2f9   :  { %1686 = shalt.err (!%p1683_p7)
}
 0x2fa   :  { %s2761_s16 = sld [smem:[#allocation97_spill]] }
 0x300   :  { %s1687_s1 = scalar_lea.hbm %s2761_s16, 2048 }
 0x301   :  { %p1688_p8 = scmp.ne.s32.totalorder %s2761_s16, %s1687_s1  ;;  %p1691_p9 = scmp.lt.u32.totalorder %s1687_s1, %s2761_s16 }
 0x303   :  { %p1693_p10 = pnand %p1691_p9, %p1688_p8 }
 0x305   :  { %1696 = shalt.err (!%p1693_p10)
}
 0x306   :  { %s2762_s3 = smov 8   ;;  %s2763_s8 = smov 128  }
 0x307   :  { %1485 = dma.vmem_to_hbm [thread:$0]  %s1480_s7, 2048, %s2761_s16, [#allocation5], %s2763_s8, %s2763_s8, %s2762_s3  }
 0x308   :  { %1707 = dma.done.wait [#allocation5], 2048  }
 0x309   :  { %1708 = vsyncadd [#allocation5], 4294965248 }
 0x30a   :  { %1489 = vsyncpa [#allocation4], 1 }
 0x30b   :  { %1490 = vsyncpa [#allocation5], 1 }
 0x30c   :  { %1491 = vsyncpa [#allocation6], 1 }
 0x30d   :  { %1492 = vsyncpa [#allocation7], 1 }

</bundles_post_ra>
